<compile_context>
chip_gen: v6e
topology: v6e:2x2x1
jax: 0.10.0
libtpu: 0.0.40
codegen_flags: <defaults>
</compile_context>

<pallas_src>
import functools
import math

import jax
import jax.numpy as jnp
from jax.experimental import pallas as pl
from jax.experimental.pallas import tpu as pltpu


# --------------------------------------------------------------------------- helpers

_SQRT1_2 = 1.0 / math.sqrt(2.0)


def _gelu_exact(x):
    # PyTorch nn.GELU default: exact erf form (kept in f32).
    return 0.5 * x * (1.0 + jax.lax.erf(x * _SQRT1_2))


def _layer_norm(x, gamma, beta, eps=1e-5):
    mu = jnp.mean(x, axis=-1, keepdims=True)
    var = jnp.mean((x - mu) ** 2, axis=-1, keepdims=True)
    return (x - mu) * jax.lax.rsqrt(var + eps) * gamma + beta


# --------------------------------------------------------------------------- fused encoder + L-layer transformer stack

def _stack_kernel(x_ref, y_ref,
                  encw_ref, encb_ref, yencw_ref, yencb_ref,
                  wq_ref, wkv_ref, bq_ref, bkv_ref,
                  wo_ref, bo_ref,
                  w1_ref, b1_ref, w2_ref, b2_ref,
                  g1_ref, be1_ref, g2_ref, be2_ref,
                  o_ref, h_ref, *, nhead, sep, nlayers):
    l = pl.program_id(1)
    S, E = h_ref.shape
    Dh = E // nhead
    scale = 1.0 / math.sqrt(Dh)

    # ---- first layer step of each batch element: run the (tiny) input encoders straight
    #      into the VMEM-resident hidden state; h never leaves VMEM until the last layer.
    @pl.when(l == 0)
    def _encode_inputs():
        x_in = x_ref[0]                                                        # (S, F)
        xe = jnp.dot(x_in, encw_ref[...],
                     preferred_element_type=jnp.float32) + encb_ref[...]       # (S, E)
        # y_encoder = Linear(1, E): (T,1) @ (1,E) + b  ==  broadcast multiply-add.
        ye = y_ref[0] * yencw_ref[...] + yencb_ref[...]                        # (sep, E)
        h_ref[pl.ds(0, sep), :] = xe[:sep] + ye
        h_ref[pl.ds(sep, S - sep), :] = xe[sep:]

    x = h_ref[...]                                                             # (S, E) f32
    xb = x.astype(jnp.bfloat16)

    # ---- self-attention: K/V only over the first `sep` (train) rows ----------
    q = jnp.dot(xb, wq_ref[0], preferred_element_type=jnp.float32) + bq_ref[0]          # (S, E)
    kv = jnp.dot(xb[:sep], wkv_ref[0], preferred_element_type=jnp.float32) + bkv_ref[0]  # (sep, 2E)
    k = kv[:, :E]
    v = kv[:, E:]

    q3 = q.reshape(S, nhead, Dh).astype(jnp.bfloat16)
    k3 = k.reshape(sep, nhead, Dh).astype(jnp.bfloat16)
    v3 = v.reshape(sep, nhead, Dh).astype(jnp.bfloat16)

    s = jnp.einsum("qhd,khd->hqk", q3, k3,
                   preferred_element_type=jnp.float32) * scale                 # (H, S, sep)
    s = s - jnp.max(s, axis=-1, keepdims=True)
    p = jnp.exp(s)
    p = p * pl.reciprocal(jnp.sum(p, axis=-1, keepdims=True), approx=True)
    ctx = jnp.einsum("hqk,khd->qhd", p.astype(jnp.bfloat16), v3,
                     preferred_element_type=jnp.float32)                       # (S, H, Dh)
    attn = jnp.dot(ctx.reshape(S, E).astype(jnp.bfloat16), wo_ref[0],
                   preferred_element_type=jnp.float32) + bo_ref[0]             # (S, E)

    # ---- post-norm residual blocks (pre_norm=False, dropout=0) ---------------
    x1 = _layer_norm(x + attn, g1_ref[0], be1_ref[0])
    ff = jnp.dot(x1.astype(jnp.bfloat16), w1_ref[0],
                 preferred_element_type=jnp.float32) + b1_ref[0]
    ff = _gelu_exact(ff)
    ff = jnp.dot(ff.astype(jnp.bfloat16), w2_ref[0],
                 preferred_element_type=jnp.float32) + b2_ref[0]
    x2 = _layer_norm(x1 + ff, g2_ref[0], be2_ref[0])

    h_ref[...] = x2

    # Only the test rows ever leave VMEM (decoder only consumes output[sep:]).
    @pl.when(l == nlayers - 1)
    def _write_out():
        o_ref[0] = x2[sep:].astype(o_ref.dtype)


_STACK_KEYS = ("enc_w_t", "enc_b", "yenc_w", "yenc_b",
               "wq_t", "wkv_t", "bq", "bkv", "wo_t", "bo",
               "w1_t", "b1", "w2_t", "b2", "g1", "be1", "g2", "be2")


def transformer_stack(x_bsf, y_bt1, params, *, nhead):
    B, S, F = x_bsf.shape
    T = y_bt1.shape[1]
    Q = S - T
    L, E, _ = params["wq_t"].shape
    HID = params["w1_t"].shape[2]

    def cmap(shape):  # constant (shared) blocks: fetched once, stay resident
        return pl.BlockSpec(shape, lambda b, l: (0,) * len(shape))

    def lmap(shape):  # per-layer stacked weights, indexed by the L grid axis
        return pl.BlockSpec(shape, lambda b, l: (l,) + (0,) * (len(shape) - 1))

    in_specs = [
        pl.BlockSpec((1, S, F), lambda b, l: (b, 0, 0)),
        pl.BlockSpec((1, T, 1), lambda b, l: (b, 0, 0)),
        cmap((F, E)), cmap((1, E)), cmap((1, E)), cmap((1, E)),
        lmap((1, E, E)), lmap((1, E, 2 * E)), lmap((1, 1, E)), lmap((1, 1, 2 * E)),
        lmap((1, E, E)), lmap((1, 1, E)),
        lmap((1, E, HID)), lmap((1, 1, HID)), lmap((1, HID, E)), lmap((1, 1, E)),
        lmap((1, 1, E)), lmap((1, 1, E)), lmap((1, 1, E)), lmap((1, 1, E)),
    ]

    # Advisory cost estimate so XLA overlaps the custom call with surrounding ops.
    flops_layer = 4 * S * E * E + 4 * T * E * E + 4 * S * T * E + 4 * S * E * HID
    flops = B * (L * flops_layer + 2 * S * F * E)
    transcendentals = B * L * (nhead * S * T + S * HID)
    stack_args = [x_bsf, y_bt1] + [params[k] for k in _STACK_KEYS]
    bytes_accessed = (sum(int(a.size) * a.dtype.itemsize for a in stack_args)
                      + B * Q * E * 4)

    return pl.pallas_call(
        functools.partial(_stack_kernel, nhead=nhead, sep=T, nlayers=L),
        grid=(B, L),
        out_shape=jax.ShapeDtypeStruct((B, Q, E), jnp.float32),
        in_specs=in_specs,
        out_specs=pl.BlockSpec((1, Q, E), lambda b, l: (b, 0, 0)),
        scratch_shapes=[pltpu.VMEM((S, E), jnp.float32)],
        compiler_params=pltpu.CompilerParams(
            dimension_semantics=("parallel", "arbitrary"),
            vmem_limit_bytes=56 * 1024 * 1024,   # fits v7x's 64 MiB physical VMEM
        ),
        cost_estimate=pl.CostEstimate(flops=int(flops),
                                      transcendentals=int(transcendentals),
                                      bytes_accessed=int(bytes_accessed)),
    )(*stack_args)


# --------------------------------------------------------------------------- fused decoder MLP (Linear -> GELU -> Linear)

def _decoder_kernel(x_ref, w1_ref, b1_ref, w2_ref, b2_ref, o_ref):
    xb = x_ref[...].astype(jnp.bfloat16)
    h = jnp.dot(xb, w1_ref[...], preferred_element_type=jnp.float32) + b1_ref[...]
    h = _gelu_exact(h)
    h = jnp.dot(h.astype(jnp.bfloat16), w2_ref[...],
                preferred_element_type=jnp.float32) + b2_ref[...]
    o_ref[...] = h.astype(o_ref.dtype)


def decoder_mlp(x, w1_t, b1, w2_t, b2):
    M, E = x.shape
    HID = w1_t.shape[1]
    NOUT = w2_t.shape[1]
    TM = M if M <= 256 else 256          # row tiles, pipelined + megacore-parallel
    return pl.pallas_call(
        _decoder_kernel,
        grid=(pl.cdiv(M, TM),),
        out_shape=jax.ShapeDtypeStruct((M, NOUT), jnp.float32),
        in_specs=[
            pl.BlockSpec((TM, E), lambda i: (i, 0)),
            pl.BlockSpec((E, HID), lambda i: (0, 0)),
            pl.BlockSpec((1, HID), lambda i: (0, 0)),
            pl.BlockSpec((HID, NOUT), lambda i: (0, 0)),
            pl.BlockSpec((1, NOUT), lambda i: (0, 0)),
        ],
        out_specs=pl.BlockSpec((TM, NOUT), lambda i: (i, 0)),
        compiler_params=pltpu.CompilerParams(dimension_semantics=("parallel",)),
    )(x, w1_t, b1, w2_t, b2)


# --------------------------------------------------------------------------- full model forward

@functools.partial(jax.jit, static_argnames=("nhead",))
def transformer_model_forward(params, train_x, train_y, test_x, *, nhead):
    """model(train_x, train_y, test_x) -> output['standard'], shape (Q, B, n_out)."""
    T, B, F = train_x.shape
    Q = test_x.shape[0]
    E = params["enc_w_t"].shape[1]

    # Batch-major layout (B, S, *) for the fused stack kernel (one grid row per batch elem).
    x_bsf = jnp.transpose(jnp.concatenate([train_x, test_x], axis=0), (1, 0, 2))  # (B, S, F)
    y_bt1 = jnp.transpose(train_y, (1, 0))[:, :, None]                            # (B, T, 1)

    test_h = transformer_stack(x_bsf, y_bt1, params, nhead=nhead)                 # (B, Q, E)

    dec_out = decoder_mlp(test_h.reshape(B * Q, E),
                          params["dec1_w_t"], params["dec1_b"],
                          params["dec2_w_t"], params["dec2_b"])                   # (B*Q, NOUT)
    return jnp.transpose(dec_out.reshape(B, Q, -1), (1, 0, 2))                    # (Q, B, NOUT)


# --------------------------------------------------------------------------- params

def init_params(key, F, E, H, HID, L, NOUT):
    """Torch-convention (out_features, in_features) weights with deterministic randoms."""
    keys = iter(jax.random.split(key, 8 + 8 * L))

    def rnd(shape, scale):
        return jax.random.normal(next(keys), shape, jnp.float32) * scale

    raw = {
        "enc_w": rnd((E, F), 1.0 / math.sqrt(F)), "enc_b": rnd((E,), 0.02),
        "yenc_w": rnd((E, 1), 1.0),               "yenc_b": rnd((E,), 0.02),
        "dec1_w": rnd((HID, E), 1.0 / math.sqrt(E)), "dec1_b": rnd((HID,), 0.02),
        "dec2_w": rnd((NOUT, HID), 1.0 / math.sqrt(HID)), "dec2_b": rnd((NOUT,), 0.02),
        "layers": [],
    }
    for _ in range(L):
        raw["layers"].append({
            # PyTorch init_weights() zeroes wo/bo/w2/b2; random here for non-trivial compute.
            "wqkv": rnd((3 * E, E), 1.0 / math.sqrt(E)), "bqkv": rnd((3 * E,), 0.02),
            "wo":   rnd((E, E), 1.0 / math.sqrt(E)),     "bo":   rnd((E,), 0.02),
            "w1":   rnd((HID, E), 1.0 / math.sqrt(E)),   "b1":   rnd((HID,), 0.02),
            "w2":   rnd((E, HID), 1.0 / math.sqrt(HID)), "b2":   rnd((E,), 0.02),
            "g1": jnp.ones((E,), jnp.float32), "be1": jnp.zeros((E,), jnp.float32),
            "g2": jnp.ones((E,), jnp.float32), "be2": jnp.zeros((E,), jnp.float32),
        })
    return raw


def prepare_params(raw):
    """Convert torch-layout params to kernel layout: stacked over L, pre-transposed to
    (in, out), MXU weights in bf16, biases / LayerNorm params in f32."""
    bf = jnp.bfloat16
    E = raw["enc_w"].shape[0]

    def stack(name):
        return jnp.stack([lay[name] for lay in raw["layers"]], axis=0)

    wqkv = stack("wqkv")                                        # (L, 3E, E)
    bqkv = stack("bqkv")                                        # (L, 3E)
    return {
        # input encoders (tiny: F and 1 input features) — kept f32
        "enc_w_t": raw["enc_w"].T,                              # (F, E)
        "enc_b":   raw["enc_b"][None, :],                       # (1, E)
        "yenc_w":  raw["yenc_w"].T,                             # (1, E)
        "yenc_b":  raw["yenc_b"][None, :],                      # (1, E)
        # attention: fused in_proj split into Q (all rows) and KV (train rows only)
        "wq_t":  jnp.transpose(wqkv[:, :E, :], (0, 2, 1)).astype(bf),   # (L, E, E)
        "wkv_t": jnp.transpose(wqkv[:, E:, :], (0, 2, 1)).astype(bf),   # (L, E, 2E)
        "bq":    bqkv[:, None, :E],                                      # (L, 1, E)
        "bkv":   bqkv[:, None, E:],                                      # (L, 1, 2E)
        "wo_t":  jnp.transpose(stack("wo"), (0, 2, 1)).astype(bf),       # (L, E, E)
        "bo":    stack("bo")[:, None, :],
        # FFN
        "w1_t":  jnp.transpose(stack("w1"), (0, 2, 1)).astype(bf),       # (L, E, HID)
        "b1":    stack("b1")[:, None, :],
        "w2_t":  jnp.transpose(stack("w2"), (0, 2, 1)).astype(bf),       # (L, HID, E)
        "b2":    stack("b2")[:, None, :],
        # LayerNorms
        "g1": stack("g1")[:, None, :], "be1": stack("be1")[:, None, :],
        "g2": stack("g2")[:, None, :], "be2": stack("be2")[:, None, :],
        # decoder MLP
        "dec1_w_t": raw["dec1_w"].T.astype(bf), "dec1_b": raw["dec1_b"][None, :],
        "dec2_w_t": raw["dec2_w"].T.astype(bf), "dec2_b": raw["dec2_b"][None, :],
    }


# --------------------------------------------------------------------------- main

if __name__ == "__main__":
    # Small config: ninp=32, nhead=2, nhid=64, nlayers=2, n_out=3
    T, Q, B, F = 8, 4, 2, 4
    E, H, HID, L, NOUT = 32, 2, 64, 2, 3

    key = jax.random.PRNGKey(0)
    kp, kx, ky, kt = jax.random.split(key, 4)

    params = prepare_params(init_params(kp, F, E, H, HID, L, NOUT))
    train_x = jax.random.normal(kx, (T, B, F), jnp.float32)
    train_y = jax.random.normal(ky, (T, B), jnp.float32)
    test_x = jax.random.normal(kt, (Q, B, F), jnp.float32)

    out = transformer_model_forward(params, train_x, train_y, test_x, nhead=H)
    out = jax.block_until_ready(out)
    assert out.shape == (Q, B, NOUT), out.shape
    assert bool(jnp.all(jnp.isfinite(out)))
    print("KERNEL_OK")
</pallas_src>

<mosaic_0001>
module attributes {stable_mosaic.version = 11 : i64} {
  func.func @_stack_kernel(%arg0: i32, %arg1: i32, %arg2: memref<1x12x4xf32, #tpu.memory_space<vmem>>, %arg3: memref<1x8x1xf32, #tpu.memory_space<vmem>>, %arg4: memref<4x32xf32, #tpu.memory_space<vmem>>, %arg5: memref<1x32xf32, #tpu.memory_space<vmem>>, %arg6: memref<1x32xf32, #tpu.memory_space<vmem>>, %arg7: memref<1x32xf32, #tpu.memory_space<vmem>>, %arg8: memref<1x32x32xbf16, #tpu.memory_space<vmem>>, %arg9: memref<1x32x64xbf16, #tpu.memory_space<vmem>>, %arg10: memref<1x1x32xf32, #tpu.memory_space<vmem>>, %arg11: memref<1x1x64xf32, #tpu.memory_space<vmem>>, %arg12: memref<1x32x32xbf16, #tpu.memory_space<vmem>>, %arg13: memref<1x1x32xf32, #tpu.memory_space<vmem>>, %arg14: memref<1x32x64xbf16, #tpu.memory_space<vmem>>, %arg15: memref<1x1x64xf32, #tpu.memory_space<vmem>>, %arg16: memref<1x64x32xbf16, #tpu.memory_space<vmem>>, %arg17: memref<1x1x32xf32, #tpu.memory_space<vmem>>, %arg18: memref<1x1x32xf32, #tpu.memory_space<vmem>>, %arg19: memref<1x1x32xf32, #tpu.memory_space<vmem>>, %arg20: memref<1x1x32xf32, #tpu.memory_space<vmem>>, %arg21: memref<1x1x32xf32, #tpu.memory_space<vmem>>, %arg22: memref<1x4x32xf32, #tpu.memory_space<vmem>>, %arg23: memref<12x32xf32, #tpu.memory_space<vmem>>) attributes {dimension_semantics = [#tpu.dimension_semantics<parallel>, #tpu.dimension_semantics<arbitrary>], iteration_bounds = array<i64: 2, 2>, scalar_prefetch = 0 : i64, scratch_operands = 1 : i64, tpu.core_type = #tpu.core_type<tc>, window_params = [{transform_indices = @transform_0, window_bounds = array<i64: 1, 12, 4>}, {transform_indices = @transform_1, window_bounds = array<i64: 1, 8, 1>}, {pipeline_mode = #tpu.pipeline_mode<synchronous>, transform_indices = @transform_2, window_bounds = array<i64: 4, 32>}, {pipeline_mode = #tpu.pipeline_mode<synchronous>, transform_indices = @transform_3, window_bounds = array<i64: 1, 32>}, {pipeline_mode = #tpu.pipeline_mode<synchronous>, transform_indices = @transform_4, window_bounds = array<i64: 1, 32>}, {pipeline_mode = #tpu.pipeline_mode<synchronous>, transform_indices = @transform_5, window_bounds = array<i64: 1, 32>}, {transform_indices = @transform_6, window_bounds = array<i64: 1, 32, 32>}, {transform_indices = @transform_7, window_bounds = array<i64: 1, 32, 64>}, {transform_indices = @transform_8, window_bounds = array<i64: 1, 1, 32>}, {transform_indices = @transform_9, window_bounds = array<i64: 1, 1, 64>}, {transform_indices = @transform_10, window_bounds = array<i64: 1, 32, 32>}, {transform_indices = @transform_11, window_bounds = array<i64: 1, 1, 32>}, {transform_indices = @transform_12, window_bounds = array<i64: 1, 32, 64>}, {transform_indices = @transform_13, window_bounds = array<i64: 1, 1, 64>}, {transform_indices = @transform_14, window_bounds = array<i64: 1, 64, 32>}, {transform_indices = @transform_15, window_bounds = array<i64: 1, 1, 32>}, {transform_indices = @transform_16, window_bounds = array<i64: 1, 1, 32>}, {transform_indices = @transform_17, window_bounds = array<i64: 1, 1, 32>}, {transform_indices = @transform_18, window_bounds = array<i64: 1, 1, 32>}, {transform_indices = @transform_19, window_bounds = array<i64: 1, 1, 32>}, {transform_indices = @transform_20, window_bounds = array<i64: 1, 4, 32>}]} {
    %c0_i32 = arith.constant 0 : i32
    %0 = arith.cmpi eq, %arg1, %c0_i32 : i32
    %1 = arith.extui %0 : i1 to i32
    %c0_i32_0 = arith.constant 0 : i32
    %2 = arith.cmpi ne, %1, %c0_i32_0 : i32
    scf.if %2 {
      %c0_69 = arith.constant 0 : index
      %c0_70 = arith.constant 0 : index
      %c0_71 = arith.constant 0 : index
      %135 = vector.load %arg2[%c0_69, %c0_70, %c0_71] : memref<1x12x4xf32, #tpu.memory_space<vmem>>, vector<1x12x4xf32>
      %136 = vector.shape_cast %135 : vector<1x12x4xf32> to vector<12x4xf32>
      %c0_72 = arith.constant 0 : index
      %c0_73 = arith.constant 0 : index
      %137 = vector.load %arg4[%c0_72, %c0_73] : memref<4x32xf32, #tpu.memory_space<vmem>>, vector<4x32xf32>
      %cst_74 = arith.constant dense<0.000000e+00> : vector<12x32xf32>
      %138 = tpu.matmul %136, %137, %cst_74 {dimension_numbers = #tpu.dot_dimension_numbers<[1], [0], [0], [1], [0, 0, 1, 1], [], []>} : vector<12x4xf32>, vector<4x32xf32>, vector<12x32xf32> -> vector<12x32xf32>
      %c0_75 = arith.constant 0 : index
      %c0_76 = arith.constant 0 : index
      %139 = vector.load %arg5[%c0_75, %c0_76] : memref<1x32xf32, #tpu.memory_space<vmem>>, vector<1x32xf32>
      %140 = vector.broadcast %139 : vector<1x32xf32> to vector<12x32xf32>
      %141 = arith.addf %138, %140 : vector<12x32xf32>
      %c0_77 = arith.constant 0 : index
      %c0_78 = arith.constant 0 : index
      %c0_79 = arith.constant 0 : index
      %142 = vector.load %arg3[%c0_77, %c0_78, %c0_79] : memref<1x8x1xf32, #tpu.memory_space<vmem>>, vector<1x8x1xf32>
      %143 = vector.shape_cast %142 : vector<1x8x1xf32> to vector<8x1xf32>
      %c0_80 = arith.constant 0 : index
      %c0_81 = arith.constant 0 : index
      %144 = vector.load %arg6[%c0_80, %c0_81] : memref<1x32xf32, #tpu.memory_space<vmem>>, vector<1x32xf32>
      %145 = vector.broadcast %143 : vector<8x1xf32> to vector<8x32xf32>
      %146 = vector.broadcast %144 : vector<1x32xf32> to vector<8x32xf32>
      %147 = arith.mulf %145, %146 : vector<8x32xf32>
      %c0_82 = arith.constant 0 : index
      %c0_83 = arith.constant 0 : index
      %148 = vector.load %arg7[%c0_82, %c0_83] : memref<1x32xf32, #tpu.memory_space<vmem>>, vector<1x32xf32>
      %149 = vector.broadcast %148 : vector<1x32xf32> to vector<8x32xf32>
      %150 = arith.addf %147, %149 : vector<8x32xf32>
      %151 = vector.extract_strided_slice %141 {offsets = [0, 0], sizes = [8, 32], strides = [1, 1]} : vector<12x32xf32> to vector<8x32xf32>
      %152 = arith.addf %151, %150 : vector<8x32xf32>
      %c0_84 = arith.constant 0 : index
      %c0_85 = arith.constant 0 : index
      %153 = vector.load %arg23[%c0_84, %c0_85] : memref<12x32xf32, #tpu.memory_space<vmem>>, vector<8x32xf32>
      tpu.vector_store %arg23[%c0_84, %c0_85], %152 {strides = array<i32>} : memref<12x32xf32, #tpu.memory_space<vmem>>, vector<8x32xf32>,
      %154 = vector.extract_strided_slice %141 {offsets = [8, 0], sizes = [4, 32], strides = [1, 1]} : vector<12x32xf32> to vector<4x32xf32>
      %c8 = arith.constant 8 : index
      %c0_86 = arith.constant 0 : index
      %155 = vector.load %arg23[%c8, %c0_86] : memref<12x32xf32, #tpu.memory_space<vmem>>, vector<4x32xf32>
      tpu.vector_store %arg23[%c8, %c0_86], %154 {strides = array<i32>} : memref<12x32xf32, #tpu.memory_space<vmem>>, vector<4x32xf32>,
    } else {
    }
    %c0 = arith.constant 0 : index
    %c0_1 = arith.constant 0 : index
    %3 = vector.load %arg23[%c0, %c0_1] : memref<12x32xf32, #tpu.memory_space<vmem>>, vector<12x32xf32>
    %4 = arith.truncf %3 : vector<12x32xf32> to vector<12x32xbf16>
    %c0_2 = arith.constant 0 : index
    %c0_3 = arith.constant 0 : index
    %c0_4 = arith.constant 0 : index
    %5 = vector.load %arg8[%c0_2, %c0_3, %c0_4] : memref<1x32x32xbf16, #tpu.memory_space<vmem>>, vector<1x32x32xbf16>
    %6 = vector.shape_cast %5 : vector<1x32x32xbf16> to vector<32x32xbf16>
    %cst = arith.constant dense<0.000000e+00> : vector<12x32xf32>
    %7 = tpu.matmul %4, %6, %cst {dimension_numbers = #tpu.dot_dimension_numbers<[1], [0], [0], [1], [0, 0, 1, 1], [], []>} : vector<12x32xbf16>, vector<32x32xbf16>, vector<12x32xf32> -> vector<12x32xf32>
    %c0_5 = arith.constant 0 : index
    %c0_6 = arith.constant 0 : index
    %c0_7 = arith.constant 0 : index
    %8 = vector.load %arg10[%c0_5, %c0_6, %c0_7] : memref<1x1x32xf32, #tpu.memory_space<vmem>>, vector<1x1x32xf32>
    %9 = vector.shape_cast %8 : vector<1x1x32xf32> to vector<1x32xf32>
    %10 = vector.broadcast %9 : vector<1x32xf32> to vector<12x32xf32>
    %11 = arith.addf %7, %10 : vector<12x32xf32>
    %12 = vector.extract_strided_slice %4 {offsets = [0, 0], sizes = [8, 32], strides = [1, 1]} : vector<12x32xbf16> to vector<8x32xbf16>
    %c0_8 = arith.constant 0 : index
    %c0_9 = arith.constant 0 : index
    %c0_10 = arith.constant 0 : index
    %13 = vector.load %arg9[%c0_8, %c0_9, %c0_10] : memref<1x32x64xbf16, #tpu.memory_space<vmem>>, vector<1x32x64xbf16>
    %14 = vector.shape_cast %13 : vector<1x32x64xbf16> to vector<32x64xbf16>
    %cst_11 = arith.constant dense<0.000000e+00> : vector<8x64xf32>
    %15 = tpu.matmul %12, %14, %cst_11 {dimension_numbers = #tpu.dot_dimension_numbers<[1], [0], [0], [1], [0, 0, 1, 1], [], []>} : vector<8x32xbf16>, vector<32x64xbf16>, vector<8x64xf32> -> vector<8x64xf32>
    %c0_12 = arith.constant 0 : index
    %c0_13 = arith.constant 0 : index
    %c0_14 = arith.constant 0 : index
    %16 = vector.load %arg11[%c0_12, %c0_13, %c0_14] : memref<1x1x64xf32, #tpu.memory_space<vmem>>, vector<1x1x64xf32>
    %17 = vector.shape_cast %16 : vector<1x1x64xf32> to vector<1x64xf32>
    %18 = vector.broadcast %17 : vector<1x64xf32> to vector<8x64xf32>
    %19 = arith.addf %15, %18 : vector<8x64xf32>
    %20 = vector.extract_strided_slice %19 {offsets = [0, 0], sizes = [8, 32], strides = [1, 1]} : vector<8x64xf32> to vector<8x32xf32>
    %21 = vector.extract_strided_slice %19 {offsets = [0, 32], sizes = [8, 32], strides = [1, 1]} : vector<8x64xf32> to vector<8x32xf32>
    %22 = vector.shape_cast %11 : vector<12x32xf32> to vector<12x2x16xf32>
    %23 = arith.truncf %22 : vector<12x2x16xf32> to vector<12x2x16xbf16>
    %24 = vector.shape_cast %20 : vector<8x32xf32> to vector<8x2x16xf32>
    %25 = arith.truncf %24 : vector<8x2x16xf32> to vector<8x2x16xbf16>
    %26 = vector.shape_cast %21 : vector<8x32xf32> to vector<8x2x16xf32>
    %27 = arith.truncf %26 : vector<8x2x16xf32> to vector<8x2x16xbf16>
    "tpu.trace_start"() <{level = 10 : i32, message = "qhd,khd->hqk"}> : () -> ()
    %cst_15 = arith.constant dense<0.000000e+00> : vector<2x12x8xf32>
    %28 = tpu.matmul %23, %25, %cst_15 {dimension_numbers = #tpu.dot_dimension_numbers<[2], [2], [0], [0], [0, 1, 0, 0, 1, 0], [1], [1]>} : vector<12x2x16xbf16>, vector<8x2x16xbf16>, vector<2x12x8xf32> -> vector<2x12x8xf32>
    "tpu.trace_stop"() : () -> ()
    %cst_16 = arith.constant 2.500000e-01 : f32
    %29 = vector.broadcast %cst_16 : f32 to vector<2x12x8xf32>
    %30 = arith.mulf %28, %29 : vector<2x12x8xf32>
    %cst_17 = arith.constant dense<0xFF800000> : vector<2x12xf32>
    %31 = vector.multi_reduction <maximumf>, %30, %cst_17 [2] : vector<2x12x8xf32> to vector<2x12xf32>
    %32 = vector.shape_cast %31 : vector<2x12xf32> to vector<2x12x1xf32>
    %33 = vector.broadcast %32 : vector<2x12x1xf32> to vector<2x12x8xf32>
    %34 = arith.subf %30, %33 : vector<2x12x8xf32>
    %35 = math.exp %34 : vector<2x12x8xf32>
    %cst_18 = arith.constant dense<0.000000e+00> : vector<2x12xf32>
    %36 = vector.multi_reduction <add>, %35, %cst_18 [2] : vector<2x12x8xf32> to vector<2x12xf32>
    %37 = vector.shape_cast %36 : vector<2x12xf32> to vector<2x12x1xf32>
    %38 = tpu.reciprocal %37 {approx = true} : vector<2x12x1xf32> -> vector<2x12x1xf32>
    %39 = vector.broadcast %38 : vector<2x12x1xf32> to vector<2x12x8xf32>
    %40 = arith.mulf %35, %39 : vector<2x12x8xf32>
    %41 = arith.truncf %40 : vector<2x12x8xf32> to vector<2x12x8xbf16>
    "tpu.trace_start"() <{level = 10 : i32, message = "hqk,khd->qhd"}> : () -> ()
    %cst_19 = arith.constant dense<0.000000e+00> : vector<2x16x12xf32>
    %42 = tpu.matmul %27, %41, %cst_19 {dimension_numbers = #tpu.dot_dimension_numbers<[0], [2], [2], [1], [0, 1, 0, 2, 1, 1], [1], [0]>} : vector<8x2x16xbf16>, vector<2x12x8xbf16>, vector<2x16x12xf32> -> vector<2x16x12xf32>
    %43 = tpu.transpose %42, [2, 0, 1] : vector<2x16x12xf32> -> vector<12x2x16xf32>
    "tpu.trace_stop"() : () -> ()
    %44 = vector.shape_cast %43 : vector<12x2x16xf32> to vector<12x32xf32>
    %45 = arith.truncf %44 : vector<12x32xf32> to vector<12x32xbf16>
    %c0_20 = arith.constant 0 : index
    %c0_21 = arith.constant 0 : index
    %c0_22 = arith.constant 0 : index
    %46 = vector.load %arg12[%c0_20, %c0_21, %c0_22] : memref<1x32x32xbf16, #tpu.memory_space<vmem>>, vector<1x32x32xbf16>
    %47 = vector.shape_cast %46 : vector<1x32x32xbf16> to vector<32x32xbf16>
    %cst_23 = arith.constant dense<0.000000e+00> : vector<12x32xf32>
    %48 = tpu.matmul %45, %47, %cst_23 {dimension_numbers = #tpu.dot_dimension_numbers<[1], [0], [0], [1], [0, 0, 1, 1], [], []>} : vector<12x32xbf16>, vector<32x32xbf16>, vector<12x32xf32> -> vector<12x32xf32>
    %c0_24 = arith.constant 0 : index
    %c0_25 = arith.constant 0 : index
    %c0_26 = arith.constant 0 : index
    %49 = vector.load %arg13[%c0_24, %c0_25, %c0_26] : memref<1x1x32xf32, #tpu.memory_space<vmem>>, vector<1x1x32xf32>
    %50 = vector.shape_cast %49 : vector<1x1x32xf32> to vector<1x32xf32>
    %51 = vector.broadcast %50 : vector<1x32xf32> to vector<12x32xf32>
    %52 = arith.addf %48, %51 : vector<12x32xf32>
    %53 = arith.addf %3, %52 : vector<12x32xf32>
    %c0_27 = arith.constant 0 : index
    %c0_28 = arith.constant 0 : index
    %c0_29 = arith.constant 0 : index
    %54 = vector.load %arg18[%c0_27, %c0_28, %c0_29] : memref<1x1x32xf32, #tpu.memory_space<vmem>>, vector<1x1x32xf32>
    %55 = vector.shape_cast %54 : vector<1x1x32xf32> to vector<1x32xf32>
    %c0_30 = arith.constant 0 : index
    %c0_31 = arith.constant 0 : index
    %c0_32 = arith.constant 0 : index
    %56 = vector.load %arg19[%c0_30, %c0_31, %c0_32] : memref<1x1x32xf32, #tpu.memory_space<vmem>>, vector<1x1x32xf32>
    %57 = vector.shape_cast %56 : vector<1x1x32xf32> to vector<1x32xf32>
    %cst_33 = arith.constant dense<0.000000e+00> : vector<12xf32>
    %58 = vector.multi_reduction <add>, %53, %cst_33 [1] : vector<12x32xf32> to vector<12xf32>
    %59 = vector.shape_cast %58 : vector<12xf32> to vector<12x1xf32>
    %cst_34 = arith.constant 3.200000e+01 : f32
    %60 = vector.broadcast %cst_34 : f32 to vector<12x1xf32>
    %61 = arith.divf %59, %60 : vector<12x1xf32>
    %62 = vector.broadcast %61 : vector<12x1xf32> to vector<12x32xf32>
    %63 = arith.subf %53, %62 : vector<12x32xf32>
    %64 = arith.mulf %63, %63 : vector<12x32xf32>
    %cst_35 = arith.constant dense<0.000000e+00> : vector<12xf32>
    %65 = vector.multi_reduction <add>, %64, %cst_35 [1] : vector<12x32xf32> to vector<12xf32>
    %66 = vector.shape_cast %65 : vector<12xf32> to vector<12x1xf32>
    %cst_36 = arith.constant 3.200000e+01 : f32
    %67 = vector.broadcast %cst_36 : f32 to vector<12x1xf32>
    %68 = arith.divf %66, %67 : vector<12x1xf32>
    %69 = vector.broadcast %61 : vector<12x1xf32> to vector<12x32xf32>
    %70 = arith.subf %53, %69 : vector<12x32xf32>
    %cst_37 = arith.constant 9.99999974E-6 : f32
    %71 = vector.broadcast %cst_37 : f32 to vector<12x1xf32>
    %72 = arith.addf %68, %71 : vector<12x1xf32>
    %73 = math.rsqrt %72 : vector<12x1xf32>
    %74 = vector.broadcast %73 : vector<12x1xf32> to vector<12x32xf32>
    %75 = arith.mulf %70, %74 : vector<12x32xf32>
    %76 = vector.broadcast %55 : vector<1x32xf32> to vector<12x32xf32>
    %77 = arith.mulf %75, %76 : vector<12x32xf32>
    %78 = vector.broadcast %57 : vector<1x32xf32> to vector<12x32xf32>
    %79 = arith.addf %77, %78 : vector<12x32xf32>
    %80 = arith.truncf %79 : vector<12x32xf32> to vector<12x32xbf16>
    %c0_38 = arith.constant 0 : index
    %c0_39 = arith.constant 0 : index
    %c0_40 = arith.constant 0 : index
    %81 = vector.load %arg14[%c0_38, %c0_39, %c0_40] : memref<1x32x64xbf16, #tpu.memory_space<vmem>>, vector<1x32x64xbf16>
    %82 = vector.shape_cast %81 : vector<1x32x64xbf16> to vector<32x64xbf16>
    %cst_41 = arith.constant dense<0.000000e+00> : vector<12x64xf32>
    %83 = tpu.matmul %80, %82, %cst_41 {dimension_numbers = #tpu.dot_dimension_numbers<[1], [0], [0], [1], [0, 0, 1, 1], [], []>} : vector<12x32xbf16>, vector<32x64xbf16>, vector<12x64xf32> -> vector<12x64xf32>
    %c0_42 = arith.constant 0 : index
    %c0_43 = arith.constant 0 : index
    %c0_44 = arith.constant 0 : index
    %84 = vector.load %arg15[%c0_42, %c0_43, %c0_44] : memref<1x1x64xf32, #tpu.memory_space<vmem>>, vector<1x1x64xf32>
    %85 = vector.shape_cast %84 : vector<1x1x64xf32> to vector<1x64xf32>
    %86 = vector.broadcast %85 : vector<1x64xf32> to vector<12x64xf32>
    %87 = arith.addf %83, %86 : vector<12x64xf32>
    %cst_45 = arith.constant 5.000000e-01 : f32
    %88 = vector.broadcast %cst_45 : f32 to vector<12x64xf32>
    %89 = arith.mulf %88, %87 : vector<12x64xf32>
    %cst_46 = arith.constant 0.707106769 : f32
    %90 = vector.broadcast %cst_46 : f32 to vector<12x64xf32>
    %91 = arith.mulf %87, %90 : vector<12x64xf32>
    %92 = math.erf %91 : vector<12x64xf32>
    %cst_47 = arith.constant 1.000000e+00 : f32
    %93 = vector.broadcast %cst_47 : f32 to vector<12x64xf32>
    %94 = arith.addf %93, %92 : vector<12x64xf32>
    %95 = arith.mulf %89, %94 : vector<12x64xf32>
    %96 = arith.truncf %95 : vector<12x64xf32> to vector<12x64xbf16>
    %c0_48 = arith.constant 0 : index
    %c0_49 = arith.constant 0 : index
    %c0_50 = arith.constant 0 : index
    %97 = vector.load %arg16[%c0_48, %c0_49, %c0_50] : memref<1x64x32xbf16, #tpu.memory_space<vmem>>, vector<1x64x32xbf16>
    %98 = vector.shape_cast %97 : vector<1x64x32xbf16> to vector<64x32xbf16>
    %cst_51 = arith.constant dense<0.000000e+00> : vector<12x32xf32>
    %99 = tpu.matmul %96, %98, %cst_51 {dimension_numbers = #tpu.dot_dimension_numbers<[1], [0], [0], [1], [0, 0, 1, 1], [], []>} : vector<12x64xbf16>, vector<64x32xbf16>, vector<12x32xf32> -> vector<12x32xf32>
    %c0_52 = arith.constant 0 : index
    %c0_53 = arith.constant 0 : index
    %c0_54 = arith.constant 0 : index
    %100 = vector.load %arg17[%c0_52, %c0_53, %c0_54] : memref<1x1x32xf32, #tpu.memory_space<vmem>>, vector<1x1x32xf32>
    %101 = vector.shape_cast %100 : vector<1x1x32xf32> to vector<1x32xf32>
    %102 = vector.broadcast %101 : vector<1x32xf32> to vector<12x32xf32>
    %103 = arith.addf %99, %102 : vector<12x32xf32>
    %104 = arith.addf %79, %103 : vector<12x32xf32>
    %c0_55 = arith.constant 0 : index
    %c0_56 = arith.constant 0 : index
    %c0_57 = arith.constant 0 : index
    %105 = vector.load %arg20[%c0_55, %c0_56, %c0_57] : memref<1x1x32xf32, #tpu.memory_space<vmem>>, vector<1x1x32xf32>
    %106 = vector.shape_cast %105 : vector<1x1x32xf32> to vector<1x32xf32>
    %c0_58 = arith.constant 0 : index
    %c0_59 = arith.constant 0 : index
    %c0_60 = arith.constant 0 : index
    %107 = vector.load %arg21[%c0_58, %c0_59, %c0_60] : memref<1x1x32xf32, #tpu.memory_space<vmem>>, vector<1x1x32xf32>
    %108 = vector.shape_cast %107 : vector<1x1x32xf32> to vector<1x32xf32>
    %cst_61 = arith.constant dense<0.000000e+00> : vector<12xf32>
    %109 = vector.multi_reduction <add>, %104, %cst_61 [1] : vector<12x32xf32> to vector<12xf32>
    %110 = vector.shape_cast %109 : vector<12xf32> to vector<12x1xf32>
    %cst_62 = arith.constant 3.200000e+01 : f32
    %111 = vector.broadcast %cst_62 : f32 to vector<12x1xf32>
    %112 = arith.divf %110, %111 : vector<12x1xf32>
    %113 = vector.broadcast %112 : vector<12x1xf32> to vector<12x32xf32>
    %114 = arith.subf %104, %113 : vector<12x32xf32>
    %115 = arith.mulf %114, %114 : vector<12x32xf32>
    %cst_63 = arith.constant dense<0.000000e+00> : vector<12xf32>
    %116 = vector.multi_reduction <add>, %115, %cst_63 [1] : vector<12x32xf32> to vector<12xf32>
    %117 = vector.shape_cast %116 : vector<12xf32> to vector<12x1xf32>
    %cst_64 = arith.constant 3.200000e+01 : f32
    %118 = vector.broadcast %cst_64 : f32 to vector<12x1xf32>
    %119 = arith.divf %117, %118 : vector<12x1xf32>
    %120 = vector.broadcast %112 : vector<12x1xf32> to vector<12x32xf32>
    %121 = arith.subf %104, %120 : vector<12x32xf32>
    %cst_65 = arith.constant 9.99999974E-6 : f32
    %122 = vector.broadcast %cst_65 : f32 to vector<12x1xf32>
    %123 = arith.addf %119, %122 : vector<12x1xf32>
    %124 = math.rsqrt %123 : vector<12x1xf32>
    %125 = vector.broadcast %124 : vector<12x1xf32> to vector<12x32xf32>
    %126 = arith.mulf %121, %125 : vector<12x32xf32>
    %127 = vector.broadcast %106 : vector<1x32xf32> to vector<12x32xf32>
    %128 = arith.mulf %126, %127 : vector<12x32xf32>
    %129 = vector.broadcast %108 : vector<1x32xf32> to vector<12x32xf32>
    %130 = arith.addf %128, %129 : vector<12x32xf32>
    %c0_66 = arith.constant 0 : index
    %c0_67 = arith.constant 0 : index
    %131 = vector.load %arg23[%c0_66, %c0_67] : memref<12x32xf32, #tpu.memory_space<vmem>>, vector<12x32xf32>
    tpu.vector_store %arg23[%c0_66, %c0_67], %130 {strides = array<i32>} : memref<12x32xf32, #tpu.memory_space<vmem>>, vector<12x32xf32>,
    %c1_i32 = arith.constant 1 : i32
    %132 = arith.cmpi eq, %arg1, %c1_i32 : i32
    %133 = arith.extui %132 : i1 to i32
    %c0_i32_68 = arith.constant 0 : i32
    %134 = arith.cmpi ne, %133, %c0_i32_68 : i32
    scf.if %134 {
      %135 = vector.extract_strided_slice %130 {offsets = [8, 0], sizes = [4, 32], strides = [1, 1]} : vector<12x32xf32> to vector<4x32xf32>
      %c0_69 = arith.constant 0 : index
      %c0_70 = arith.constant 0 : index
      %c0_71 = arith.constant 0 : index
      %136 = vector.load %arg22[%c0_69, %c0_70, %c0_71] : memref<1x4x32xf32, #tpu.memory_space<vmem>>, vector<1x4x32xf32>
      %137 = vector.shape_cast %136 : vector<1x4x32xf32> to vector<4x32xf32>
      %138 = vector.shape_cast %135 : vector<4x32xf32> to vector<1x4x32xf32>
      tpu.vector_store %arg22[%c0_69, %c0_70, %c0_71], %138 {strides = array<i32>} : memref<1x4x32xf32, #tpu.memory_space<vmem>>, vector<1x4x32xf32>,
    } else {
    }
    return
  }
  func.func @transform_0(%arg0: i32, %arg1: i32) -> (i32, i32, i32) {
    %c0_i32 = arith.constant 0 : i32
    %c0_i32_0 = arith.constant 0 : i32
    %c0_i32_1 = arith.constant 0 : i32
    return %arg0, %c0_i32, %c0_i32_0 : i32, i32, i32
  }
  func.func @transform_1(%arg0: i32, %arg1: i32) -> (i32, i32, i32) {
    %c0_i32 = arith.constant 0 : i32
    %c0_i32_0 = arith.constant 0 : i32
    %c0_i32_1 = arith.constant 0 : i32
    return %arg0, %c0_i32, %c0_i32_0 : i32, i32, i32
  }
  func.func @transform_2(%arg0: i32, %arg1: i32) -> (i32, i32) {
    %c0_i32 = arith.constant 0 : i32
    %c0_i32_0 = arith.constant 0 : i32
    %c0_i32_1 = arith.constant 0 : i32
    return %c0_i32, %c0_i32_0 : i32, i32
  }
  func.func @transform_3(%arg0: i32, %arg1: i32) -> (i32, i32) {
    %c0_i32 = arith.constant 0 : i32
    %c0_i32_0 = arith.constant 0 : i32
    %c0_i32_1 = arith.constant 0 : i32
    return %c0_i32, %c0_i32_0 : i32, i32
  }
  func.func @transform_4(%arg0: i32, %arg1: i32) -> (i32, i32) {
    %c0_i32 = arith.constant 0 : i32
    %c0_i32_0 = arith.constant 0 : i32
    %c0_i32_1 = arith.constant 0 : i32
    return %c0_i32, %c0_i32_0 : i32, i32
  }
  func.func @transform_5(%arg0: i32, %arg1: i32) -> (i32, i32) {
    %c0_i32 = arith.constant 0 : i32
    %c0_i32_0 = arith.constant 0 : i32
    %c0_i32_1 = arith.constant 0 : i32
    return %c0_i32, %c0_i32_0 : i32, i32
  }
  func.func @transform_6(%arg0: i32, %arg1: i32) -> (i32, i32, i32) {
    %c0_i32 = arith.constant 0 : i32
    %c0_i32_0 = arith.constant 0 : i32
    %c0_i32_1 = arith.constant 0 : i32
    return %arg1, %c0_i32, %c0_i32_0 : i32, i32, i32
  }
  func.func @transform_7(%arg0: i32, %arg1: i32) -> (i32, i32, i32) {
    %c0_i32 = arith.constant 0 : i32
    %c0_i32_0 = arith.constant 0 : i32
    %c0_i32_1 = arith.constant 0 : i32
    return %arg1, %c0_i32, %c0_i32_0 : i32, i32, i32
  }
  func.func @transform_8(%arg0: i32, %arg1: i32) -> (i32, i32, i32) {
    %c0_i32 = arith.constant 0 : i32
    %c0_i32_0 = arith.constant 0 : i32
    %c0_i32_1 = arith.constant 0 : i32
    return %arg1, %c0_i32, %c0_i32_0 : i32, i32, i32
  }
  func.func @transform_9(%arg0: i32, %arg1: i32) -> (i32, i32, i32) {
    %c0_i32 = arith.constant 0 : i32
    %c0_i32_0 = arith.constant 0 : i32
    %c0_i32_1 = arith.constant 0 : i32
    return %arg1, %c0_i32, %c0_i32_0 : i32, i32, i32
  }
  func.func @transform_10(%arg0: i32, %arg1: i32) -> (i32, i32, i32) {
    %c0_i32 = arith.constant 0 : i32
    %c0_i32_0 = arith.constant 0 : i32
    %c0_i32_1 = arith.constant 0 : i32
    return %arg1, %c0_i32, %c0_i32_0 : i32, i32, i32
  }
  func.func @transform_11(%arg0: i32, %arg1: i32) -> (i32, i32, i32) {
    %c0_i32 = arith.constant 0 : i32
    %c0_i32_0 = arith.constant 0 : i32
    %c0_i32_1 = arith.constant 0 : i32
    return %arg1, %c0_i32, %c0_i32_0 : i32, i32, i32
  }
  func.func @transform_12(%arg0: i32, %arg1: i32) -> (i32, i32, i32) {
    %c0_i32 = arith.constant 0 : i32
    %c0_i32_0 = arith.constant 0 : i32
    %c0_i32_1 = arith.constant 0 : i32
    return %arg1, %c0_i32, %c0_i32_0 : i32, i32, i32
  }
  func.func @transform_13(%arg0: i32, %arg1: i32) -> (i32, i32, i32) {
    %c0_i32 = arith.constant 0 : i32
    %c0_i32_0 = arith.constant 0 : i32
    %c0_i32_1 = arith.constant 0 : i32
    return %arg1, %c0_i32, %c0_i32_0 : i32, i32, i32
  }
  func.func @transform_14(%arg0: i32, %arg1: i32) -> (i32, i32, i32) {
    %c0_i32 = arith.constant 0 : i32
    %c0_i32_0 = arith.constant 0 : i32
    %c0_i32_1 = arith.constant 0 : i32
    return %arg1, %c0_i32, %c0_i32_0 : i32, i32, i32
  }
  func.func @transform_15(%arg0: i32, %arg1: i32) -> (i32, i32, i32) {
    %c0_i32 = arith.constant 0 : i32
    %c0_i32_0 = arith.constant 0 : i32
    %c0_i32_1 = arith.constant 0 : i32
    return %arg1, %c0_i32, %c0_i32_0 : i32, i32, i32
  }
  func.func @transform_16(%arg0: i32, %arg1: i32) -> (i32, i32, i32) {
    %c0_i32 = arith.constant 0 : i32
    %c0_i32_0 = arith.constant 0 : i32
    %c0_i32_1 = arith.constant 0 : i32
    return %arg1, %c0_i32, %c0_i32_0 : i32, i32, i32
  }
  func.func @transform_17(%arg0: i32, %arg1: i32) -> (i32, i32, i32) {
    %c0_i32 = arith.constant 0 : i32
    %c0_i32_0 = arith.constant 0 : i32
    %c0_i32_1 = arith.constant 0 : i32
    return %arg1, %c0_i32, %c0_i32_0 : i32, i32, i32
  }
  func.func @transform_18(%arg0: i32, %arg1: i32) -> (i32, i32, i32) {
    %c0_i32 = arith.constant 0 : i32
    %c0_i32_0 = arith.constant 0 : i32
    %c0_i32_1 = arith.constant 0 : i32
    return %arg1, %c0_i32, %c0_i32_0 : i32, i32, i32
  }
  func.func @transform_19(%arg0: i32, %arg1: i32) -> (i32, i32, i32) {
    %c0_i32 = arith.constant 0 : i32
    %c0_i32_0 = arith.constant 0 : i32
    %c0_i32_1 = arith.constant 0 : i32
    return %arg1, %c0_i32, %c0_i32_0 : i32, i32, i32
  }
  func.func @transform_20(%arg0: i32, %arg1: i32) -> (i32, i32, i32) {
    %c0_i32 = arith.constant 0 : i32
    %c0_i32_0 = arith.constant 0 : i32
    %c0_i32_1 = arith.constant 0 : i32
    return %arg0, %c0_i32, %c0_i32_0 : i32, i32, i32
  }
}

module attributes {stable_mosaic.version = 11 : i64} {
  func.func @_decoder_kernel(%arg0: i32, %arg1: memref<8x32xf32, #tpu.memory_space<vmem>>, %arg2: memref<32x64xbf16, #tpu.memory_space<vmem>>, %arg3: memref<1x64xf32, #tpu.memory_space<vmem>>, %arg4: memref<64x3xbf16, #tpu.memory_space<vmem>>, %arg5: memref<1x3xf32, #tpu.memory_space<vmem>>, %arg6: memref<8x3xf32, #tpu.memory_space<vmem>>) attributes {dimension_semantics = [#tpu.dimension_semantics<parallel>], iteration_bounds = array<i64: 1>, scalar_prefetch = 0 : i64, scratch_operands = 0 : i64, tpu.core_type = #tpu.core_type<tc>, window_params = [{transform_indices = @transform_0, window_bounds = array<i64: 8, 32>}, {pipeline_mode = #tpu.pipeline_mode<synchronous>, transform_indices = @transform_1, window_bounds = array<i64: 32, 64>}, {pipeline_mode = #tpu.pipeline_mode<synchronous>, transform_indices = @transform_2, window_bounds = array<i64: 1, 64>}, {pipeline_mode = #tpu.pipeline_mode<synchronous>, transform_indices = @transform_3, window_bounds = array<i64: 64, 3>}, {pipeline_mode = #tpu.pipeline_mode<synchronous>, transform_indices = @transform_4, window_bounds = array<i64: 1, 3>}, {transform_indices = @transform_5, window_bounds = array<i64: 8, 3>}]} {
    %c0 = arith.constant 0 : index
    %c0_0 = arith.constant 0 : index
    %0 = vector.load %arg1[%c0, %c0_0] : memref<8x32xf32, #tpu.memory_space<vmem>>, vector<8x32xf32>
    %1 = arith.truncf %0 : vector<8x32xf32> to vector<8x32xbf16>
    %c0_1 = arith.constant 0 : index
    %c0_2 = arith.constant 0 : index
    %2 = vector.load %arg2[%c0_1, %c0_2] : memref<32x64xbf16, #tpu.memory_space<vmem>>, vector<32x64xbf16>
    %cst = arith.constant dense<0.000000e+00> : vector<8x64xf32>
    %3 = tpu.matmul %1, %2, %cst {dimension_numbers = #tpu.dot_dimension_numbers<[1], [0], [0], [1], [0, 0, 1, 1], [], []>} : vector<8x32xbf16>, vector<32x64xbf16>, vector<8x64xf32> -> vector<8x64xf32>
    %c0_3 = arith.constant 0 : index
    %c0_4 = arith.constant 0 : index
    %4 = vector.load %arg3[%c0_3, %c0_4] : memref<1x64xf32, #tpu.memory_space<vmem>>, vector<1x64xf32>
    %5 = vector.broadcast %4 : vector<1x64xf32> to vector<8x64xf32>
    %6 = arith.addf %3, %5 : vector<8x64xf32>
    %cst_5 = arith.constant 5.000000e-01 : f32
    %7 = vector.broadcast %cst_5 : f32 to vector<8x64xf32>
    %8 = arith.mulf %7, %6 : vector<8x64xf32>
    %cst_6 = arith.constant 0.707106769 : f32
    %9 = vector.broadcast %cst_6 : f32 to vector<8x64xf32>
    %10 = arith.mulf %6, %9 : vector<8x64xf32>
    %11 = math.erf %10 : vector<8x64xf32>
    %cst_7 = arith.constant 1.000000e+00 : f32
    %12 = vector.broadcast %cst_7 : f32 to vector<8x64xf32>
    %13 = arith.addf %12, %11 : vector<8x64xf32>
    %14 = arith.mulf %8, %13 : vector<8x64xf32>
    %15 = arith.truncf %14 : vector<8x64xf32> to vector<8x64xbf16>
    %c0_8 = arith.constant 0 : index
    %c0_9 = arith.constant 0 : index
    %16 = vector.load %arg4[%c0_8, %c0_9] : memref<64x3xbf16, #tpu.memory_space<vmem>>, vector<64x3xbf16>
    %cst_10 = arith.constant dense<0.000000e+00> : vector<8x3xf32>
    %17 = tpu.matmul %15, %16, %cst_10 {dimension_numbers = #tpu.dot_dimension_numbers<[1], [0], [0], [1], [0, 0, 1, 1], [], []>} : vector<8x64xbf16>, vector<64x3xbf16>, vector<8x3xf32> -> vector<8x3xf32>
    %c0_11 = arith.constant 0 : index
    %c0_12 = arith.constant 0 : index
    %18 = vector.load %arg5[%c0_11, %c0_12] : memref<1x3xf32, #tpu.memory_space<vmem>>, vector<1x3xf32>
    %19 = vector.broadcast %18 : vector<1x3xf32> to vector<8x3xf32>
    %20 = arith.addf %17, %19 : vector<8x3xf32>
    %c0_13 = arith.constant 0 : index
    %c0_14 = arith.constant 0 : index
    %21 = vector.load %arg6[%c0_13, %c0_14] : memref<8x3xf32, #tpu.memory_space<vmem>>, vector<8x3xf32>
    tpu.vector_store %arg6[%c0_13, %c0_14], %20 {strides = array<i32>} : memref<8x3xf32, #tpu.memory_space<vmem>>, vector<8x3xf32>,
    return
  }
  func.func @transform_0(%arg0: i32) -> (i32, i32) {
    %c0_i32 = arith.constant 0 : i32
    %c0_i32_0 = arith.constant 0 : i32
    return %arg0, %c0_i32 : i32, i32
  }
  func.func @transform_1(%arg0: i32) -> (i32, i32) {
    %c0_i32 = arith.constant 0 : i32
    %c0_i32_0 = arith.constant 0 : i32
    %c0_i32_1 = arith.constant 0 : i32
    return %c0_i32, %c0_i32_0 : i32, i32
  }
  func.func @transform_2(%arg0: i32) -> (i32, i32) {
    %c0_i32 = arith.constant 0 : i32
    %c0_i32_0 = arith.constant 0 : i32
    %c0_i32_1 = arith.constant 0 : i32
    return %c0_i32, %c0_i32_0 : i32, i32
  }
  func.func @transform_3(%arg0: i32) -> (i32, i32) {
    %c0_i32 = arith.constant 0 : i32
    %c0_i32_0 = arith.constant 0 : i32
    %c0_i32_1 = arith.constant 0 : i32
    return %c0_i32, %c0_i32_0 : i32, i32
  }
  func.func @transform_4(%arg0: i32) -> (i32, i32) {
    %c0_i32 = arith.constant 0 : i32
    %c0_i32_0 = arith.constant 0 : i32
    %c0_i32_1 = arith.constant 0 : i32
    return %c0_i32, %c0_i32_0 : i32, i32
  }
  func.func @transform_5(%arg0: i32) -> (i32, i32) {
    %c0_i32 = arith.constant 0 : i32
    %c0_i32_0 = arith.constant 0 : i32
    return %arg0, %c0_i32 : i32, i32
  }
}

</mosaic_0001>

<bundles_post_ra>
// kernel: transformer_model_forward.3
= control target key start
LH: loop header
LB: loop body
LE: loop exit
PB: predicated region body
PF: predicated region fallthrough
CT: control target
= control target key end

     0   :  { %v233_v0 = vmov 0.0   ;;  %vm234_vm0 = vmmov 0   ;;  %vm46_vm1 = vcmask 261120   ;;  %vm135_vm2 = vcmask 523264   ;;  %s295_s1 = inlined_call_operand.vmem [shape: bf16[32,64], index: 1, kind: input, shape index: {}]   ;;  %s296_s0 = inlined_call_operand.vmem [shape: f32[8,32], index: 0, kind: input, shape index: {}]   ;;  %s297_s3 = inlined_call_operand.vmem [shape: bf16[64,3], index: 3, kind: input, shape index: {}]   ;;  %s298_s2 = inlined_call_operand.vmem [shape: f32[1,64], index: 2, kind: input, shape index: {}]   ;;  %s299_s4 = inlined_call_operand.vmem [shape: f32[1,3], index: 4, kind: input, shape index: {}]   ;;  %s300_s5 = inlined_call_operand.vmem [shape: f32[8,3], index: 5, kind: output, shape index: {}]  }
   0x1   :  { %203 = vmatprep.subr.bf16.mxu0 %v233_v0  ;;  %v225_v1 = vld [vmem:[%s295_s1 + $0x8] sm:$0xff]   ;;  %207 = vmatprep.mubr.msk.bf16.mxu0 %vm234_vm0, %v233_v0  ;;  %v226_v2 = vld [vmem:[%s295_s1] sm:$0xff]   ;;  %v227_v5 = vld [vmem:[%s297_s3 + $0x18] sm:$0xff]   ;;  %vm179_vm3 = vcmask 23552  }
   0x2   :  { %211 = vmatprep.subr.bf16.mxu1 %v233_v0  ;;  %219 = vmatprep.mubr.msk.bf16.mxu1 %vm234_vm0, %v233_v0  ;;  %v21_v3 = vld [vmem:[%s296_s0] sm:$0xff]  ;;  %v228_v6 = vld [vmem:[%s297_s3 + $0x10] sm:$0xff]   ;;  %v229_v7 = vld [vmem:[%s297_s3 + $0x8] sm:$0xff]  }
   0x3   :  { %204 = vmatpush3.bf16.msra.mxu0 %v225_v1  ;;  %v22_v4 = vpack.c.bf16 %v21_v3, %v21_v3  ;;  %212 = vmatpush3.bf16.msra.mxu1 %v227_v5  ;;  %v230_v8 = vld [vmem:[%s297_s3] sm:$0xff]  }
   0x4   :  { %205 = vmatprep.subr.bf16.mxu0 %v233_v0  ;;  %213 = vmatprep.subr.bf16.mxu1 %v233_v0  ;;  %v185_v9 = vld [vmem:[%s298_s2] ss:$0 sm:$0xff] }
   0x5   :  { %v189_v21 = vld [vmem:[%s299_s4] ss:$0 sm:$0xff] }
   0x7   :  { %206 = vmatpush3.bf16.msra.mxu0 %v226_v2  ;;  %214 = vmatpush3.bf16.msra.mxu1 %v228_v6 }
   0x8   :  { %215 = vmatprep.subr.bf16.mxu1 %v233_v0 }
   0xa   :  { %208 = vmatmul.mubr.msk.bf16.vlgmr.msra.gmra.mxu0 %vm46_vm1, %v22_v4 }
   0xb   :  { %216 = vmatpush3.bf16.msra.mxu1 %v229_v7 }
   0xc   :  { %217 = vmatprep.subr.bf16.mxu1 %v233_v0 }
   0xf   :  { %218 = vmatpush3.bf16.msra.mxu1 %v230_v8 }
  0xca   :  { %v84_v10 = vpop.f32.mrf.mxu0 }
  0xcb   :  { %v85_v11 = vadd.f32 %v185_v9, %v84_v10 }
  0xcc   :  { %v209_v12 = vpop.f32.mrf.mxu0 }
  0xcd   :  { %v91_v13 = vmul.f32 0.70710677, %v85_v11  ;;  %v90_v17 = vmul.f32 0.5, %v85_v11 }
  0xce   :  { %v87_v14 = vpop.f32.mrf.mxu0 }
  0xcf   :  { %231 = verf.f32 %v91_v13 }
  0xd0   :  { %v210_v15 = vpop.f32.mrf.mxu0 }
  0xdc   :  { %v232_v16 = vpop.eup %231 }
  0xdd   :  { %v93_v18 = vadd.f32 1.0, %v232_v16 }
  0xdf   :  { %v94_v19 = vmul.f32 %v93_v18, %v90_v17 }
  0xe1   :  { %v95_v20 = vpack.c.bf16 %v94_v19, %v94_v19 }
  0xe3   :  { %220 = vmatmul.mubr.msk.bf16.vlgmr.msra.gmra.mxu1 %vm135_vm2, %v95_v20 }
 0x1a3   :  { %v173_v22 = vpop.f32.mrf.mxu1 }
 0x1a4   :  { %v174_v23 = vadd.f32 %v189_v21, %v173_v22 }
 0x1a5   :  { %v221_v24 = vpop.f32.mrf.mxu1 }
 0x1a6   :  { %180 = vst.msk [vmem:[%s300_s5] sm:$0xff] %vm179_vm3, %v174_v23 }
 0x1a7   :  { %v176_v25 = vpop.f32.mrf.mxu1 }
 0x1a9   :  { %v222_v26 = vpop.f32.mrf.mxu1 }

// kernel: transformer_model_forward.2
= control target key start
LH: loop header
LB: loop body
LE: loop exit
PB: predicated region body
PF: predicated region fallthrough
CT: control target
= control target key end

     0   :  { %s4266_s22 = smov 0   ;;  %s4268_s23 = smov 0   ;;  %s4758_s0 = inlined_call_operand.vmem [shape: f32[2,12,4], index: 0, kind: input, shape index: {}]   ;;  %s4759_s1 = inlined_call_operand.vmem [shape: f32[2,8,1], index: 1, kind: input, shape index: {}]   ;;  %s4760_s2 = inlined_call_operand.vmem [shape: f32[4,32], index: 2, kind: input, shape index: {}]   ;;  %s4761_s3 = inlined_call_operand.vmem [shape: f32[1,32], index: 3, kind: input, shape index: {}]   ;;  %s4762_s4 = inlined_call_operand.vmem [shape: f32[1,32], index: 4, kind: input, shape index: {}]   ;;  %s4763_s5 = inlined_call_operand.vmem [shape: f32[1,32], index: 5, kind: input, shape index: {}]   ;;  %s4764_s6 = inlined_call_operand.vmem [shape: bf16[2,32,32], index: 6, kind: input, shape index: {}]   ;;  %s4765_s7 = inlined_call_operand.vmem [shape: bf16[2,32,64], index: 7, kind: input, shape index: {}]   ;;  %s4766_s8 = inlined_call_operand.vmem [shape: f32[2,1,32], index: 8, kind: input, shape index: {}]   ;;  %s4767_s9 = inlined_call_operand.vmem [shape: f32[2,1,64], index: 9, kind: input, shape index: {}]   ;;  %s4768_s10 = inlined_call_operand.vmem [shape: bf16[2,32,32], index: 10, kind: input, shape index: {}]   ;;  %s4769_s11 = inlined_call_operand.vmem [shape: f32[2,1,32], index: 11, kind: input, shape index: {}]   ;;  %s4770_s12 = inlined_call_operand.vmem [shape: bf16[2,32,64], index: 12, kind: input, shape index: {}]   ;;  %s4771_s13 = inlined_call_operand.vmem [shape: f32[2,1,64], index: 13, kind: input, shape index: {}]   ;;  %s4772_s14 = inlined_call_operand.vmem [shape: bf16[2,64,32], index: 14, kind: input, shape index: {}]   ;;  %s4773_s15 = inlined_call_operand.vmem [shape: f32[2,1,32], index: 15, kind: input, shape index: {}]   ;;  %s4774_s16 = inlined_call_operand.vmem [shape: f32[2,1,32], index: 16, kind: input, shape index: {}]   ;;  %s4775_s17 = inlined_call_operand.vmem [shape: f32[2,1,32], index: 17, kind: input, shape index: {}]   ;;  %s4776_s18 = inlined_call_operand.vmem [shape: f32[2,1,32], index: 18, kind: input, shape index: {}]   ;;  %s4777_s19 = inlined_call_operand.vmem [shape: f32[2,1,32], index: 19, kind: input, shape index: {}]   ;;  %s4778_s20 = inlined_call_operand.vmem [shape: f32[2,4,32], index: 20, kind: output, shape index: {}]  }
   0x1   :  { %4785 = sst [smem:[#allocation11_spill]] %s4758_s0  ;;  %s4270_s24 = smov 0  }
   0x2   :  { %4786 = sst [smem:[#allocation12_spill]] %s4759_s1  ;;  %s4264_s1 = smov 0  }
   0x3   :  { %4787 = sst [smem:[#allocation13_spill]] %s4760_s2  ;;  %s4272_s2 = smov 0  }
   0x4   :  { %4788 = sst [smem:[#allocation14_spill]] %s4761_s3 }
   0x5   :  { %4789 = sst [smem:[#allocation15_spill]] %s4762_s4 }
   0x6   :  { %4790 = sst [smem:[#allocation16_spill]] %s4763_s5 }
   0x7   :  { %4791 = sst [smem:[#allocation17_spill]] %s4764_s6 }
   0x8   :  { %4792 = sst [smem:[#allocation18_spill]] %s4765_s7 }
   0x9   :  { %4793 = sst [smem:[#allocation19_spill]] %s4768_s10 }
   0xa   :  { %4794 = sst [smem:[#allocation20_spill]] %s4769_s11 }
   0xb   :  { %4795 = sst [smem:[#allocation21_spill]] %s4770_s12 }
   0xc   :  { %4796 = sst [smem:[#allocation22_spill]] %s4771_s13 }
   0xd   :  { %4797 = sst [smem:[#allocation23_spill]] %s4772_s14 }
   0xe   :  { %4798 = sst [smem:[#allocation24_spill]] %s4775_s17 }
   0xf   :  { %4799 = sst [smem:[#allocation25_spill]] %s4776_s18 }
  0x10   :  { %4800 = sst [smem:[#allocation26_spill]] %s4777_s19 }
  0x11   :  { %4801 = sst [smem:[#allocation27_spill]] %s4778_s20 }
  0x12 LB: > { %4802 = sst [smem:[#allocation3_spill]] %s4132_s1  ;;  %s39_s25 = sadd.s32 1, %s4140_s23  ;;  %s4148_s2 = sphi %s4272_s2, %s30_s2   ;;  %s4144_s24 = sphi %s4270_s24, %s4845_s24   ;;  %s4140_s23 = sphi %s4268_s23, %s4844_s23   ;;  %s4136_s22 = sphi %s4266_s22, %s4843_s22   ;;  %s4132_s1 = sphi %s4264_s1, %s4842_s1  }
  0x13   : > { %4803 = sst [smem:[#allocation4_spill]] %s4140_s23  ;;  %s42_s3 = sadd.s32 1, %s4144_s24 }
  0x14   : > { %4804 = sst [smem:[#allocation5_spill]] %s4144_s24  ;;  %p40_p0 = scmp.ge.s32.totalorder %s39_s25, 2 }
  0x15   : > { %4805 = sst [smem:[#allocation6_spill]] %s4148_s2  ;;  %p3842_p1 = scmp.ge.s32.totalorder %s4148_s2, 1 }
  0x16   : > { %p705_p2 = scmp.lt.s32.totalorder %s4148_s2, 5  ;;  %s4847_s25 = smov (%p40_p0, %s39_s25), 0 }
  0x17   : > { %4806 = sst [smem:[#allocation7_spill]] %s4847_s25  ;;  %s4849_s3 = smov (!%p40_p0, %s42_s3), %s4144_s24 }
  0x18   : > { %p706_p3 = pnand %p3842_p1, %p705_p2  ;;  %p44_p4 = scmp.ge.s32.totalorder %s4849_s3, 2 }
  0x1a   : > { %s4851_s3 = smov (%p44_p4, %s4849_s3), 0  ;;  %709 = sbr.rel (%p706_p3) target bundleno = 3152 (0xc50), region = 100 }
  0x1b   : > { %4807 = sst [smem:[#allocation8_spill]] %s4851_s3 }
  0x1f   : > { %p818_p5 = scmp.lt.s32.totalorder %s4136_s22, 1  ;;  %p827_p6 = scmp.lt.s32.totalorder %s4132_s1, 1 }
  0x20   : > { %s4808_s30 = sld [smem:[#allocation11_spill]] }
  0x21   : > { %s4853_s22 = smov (!%p818_p5, %s4136_s22), 1  ;;  %s4809_s25 = sld [smem:[#allocation12_spill]] }
  0x22   : > { %s4298_s26 = scalar_select %p827_p6, %s4132_s1, 1 }
  0x23   : > { %s3906_s27 = sshll.u32 %s4853_s22, 4  ;;  %s3845_s28 = sshll.u32 %s4853_s22, 3 }
  0x24   : > { %s3907_s23 = sshll.u32 %s4298_s26, 4  ;;  %s4810_s6 = sld [smem:[#allocation17_spill]] }
  0x25   : > { %s4811_s7 = sld [smem:[#allocation18_spill]]  ;;  %s3911_s29 = sshll.u32 %s4298_s26, 5 }
  0x26   : > { %s822_s0 = scalar_lea.vmem %s4808_s30, %s3906_s27  ;;  %s4812_s10 = sld [smem:[#allocation19_spill]] }
  0x27   : > { %s826_s24 = scalar_lea.vmem %s4809_s25, %s3845_s28  ;;  %s4814_s12 = sld [smem:[#allocation21_spill]] }
  0x28   : > { %s4817_s14 = sld [smem:[#allocation23_spill]]  ;;  %s869_s1 = scalar_lea.vmem %s4774_s16, %s4298_s26 }
  0x29   : > { %s4822_s30 = sld [smem:[#allocation27_spill]] }
  0x2a   : > { %s4314_s18 = scalar_lea.vmem %s4810_s6, %s3907_s23  ;;  %s4823_s19 = sld [smem:[#allocation3_spill]] }
  0x2b   : > { %s4319_s27 = scalar_lea.vmem %s4811_s7, %s3907_s23  ;;  %s4820_s7 = sld [smem:[#allocation25_spill]] }
  0x2c   : > { %s4328_s21 = scalar_lea.vmem %s4812_s10, %s3907_s23 }
  0x2d   : > { %s4337_s6 = scalar_lea.vmem %s4814_s12, %s3907_s23  ;;  %s4819_s12 = sld [smem:[#allocation24_spill]] }
  0x2e   : > { %4815 = sst [smem:[#allocation9_spill]] %s4337_s6  ;;  %s4347_s28 = scalar_lea.vmem %s4817_s14, %s3911_s29 }
  0x2f   : > { %4818 = sst [smem:[#allocation10_spill]] %s4347_s28  ;;  %s3856_s14 = sshll.u32 %s4853_s22, 2 }
  0x30   : > { %s4821_s29 = sld [smem:[#allocation26_spill]]  ;;  %s4372_s5 = scalar_lea.vmem %s4822_s30, %s3856_s14 }
  0x31   : > { %s875_s13 = scalar_lea.vmem %s4820_s7, %s4298_s26  ;;  %p3857_p7 = scmp.ne.s32.totalorder %s4823_s19, 0 }
  0x32   : > { %s4825_s14 = sld [smem:[#allocation15_spill]] (!%p3857_p7) }
  0x33   : > { %s872_s6 = scalar_lea.vmem %s4819_s12, %s4298_s26  ;;  %887 = sbr.rel (%p3857_p7) target bundleno = 261 (0x105), region = 104 }
  0x34   : > { %s4824_s12 = sld [smem:[#allocation13_spill]] (!%p3857_p7) }
  0x35   : > { %s4826_s20 = sld [smem:[#allocation16_spill]] (!%p3857_p7) }
  0x36   : > { %s878_s3 = scalar_lea.vmem %s4821_s29, %s4298_s26  ;;  %s4827_s25 = sld [smem:[#allocation14_spill]] (!%p3857_p7) }
  0x38   : > { %vm905_vm0 = vcmask 1043456   ;;  %v888_v1 = vld [vmem:[%s822_s0] sm:$0xff]  ;;  %vm898_vm1 = vcmask 31744   ;;  %v889_v2 = vld [vmem:[%s822_s0 + $0x8] sm:$0xf]  ;;  %v4150_v4 = vmov 0  }
  0x39   : > { %3942 = vmatprep.mubr.msk.f32.mxu0 %vm898_vm1, %v888_v1  ;;  %v984_v3 = vld [vmem:[%s826_s24] sm:$0xff]  ;;  %4062 = vset.pattern.permute.xlu0 %v4150_v4  ;;  %vm1009_vm2 = vcmask 257024   ;;  %vm1007_vm3 = vcmask 261120  }
  0x3a   : > { %v890_v0 = vld [vmem:[%s4824_s12] sm:$0xf]  ;;  %988 = vperm.xlu0 %4062, %v984_v3  }
  0x3b   : > { %3940 = vmatprep.subr.msk.mxu0 %vm905_vm0, %v890_v0  ;;  %v3862_v5 = vld [vmem:[%s4825_s14] ss:$0 sm:$0xff] }
  0x3c   : > { %3941 = vmatpush3.msk.msra.mxu0 %vm905_vm0, %v890_v0  ;;  %v3863_v8 = vld [vmem:[%s4826_s20] ss:$0 sm:$0xff] }
  0x3d   : > { %3943 = vmatmul.mubr.msk.f32.vlgmr.msra.gmra.mxu0 %vm898_vm1, %v889_v2  ;;  %v3858_v9 = vld [vmem:[%s4827_s25] ss:$0 sm:$0xff] }
  0xb5   : > { %v989_v6 = vpop.permute.xlu0 %988 }
  0xb6   : > { %v997_v7 = vmul.f32 %v3862_v5, %v989_v6 }
  0xb8   : > { %v1005_v11 = vadd.f32 %v3863_v8, %v997_v7 }
  0xfd   : > { %v3944_v10 = vpop.f32.mrf.mxu0 }
  0xfe   : > { %v981_v12 = vadd.f32 %v3944_v10, %v3858_v9 }
  0xff   : > { %v975_v13 = vpop.f32.mrf.mxu0 }
 0x100   : > { %1010 = vst.msk [vmem:[#allocation2 + $0x8] sm:$0xf] %vm1009_vm2, %v981_v12  ;;  %v976_v14 = vadd.f32 %v3858_v9, %v975_v13 }
 0x102   : > { %v1006_v15 = vadd.f32 %v1005_v11, %v976_v14 }
 0x104   : > { %1008 = vst.msk [vmem:[#allocation2] sm:$0xff] %vm1007_vm3, %v1006_v15 }
 0x105 PF: > { %v4068_v16 = vld [vmem:[%s4314_s18 + $0x8] sm:$0xff]   ;;  %v4151_v17 = vmov 0.0   ;;  %v4069_v18 = vld [vmem:[%s4314_s18] sm:$0xff]   ;;  %vm4152_vm4 = vmmov 0   ;;  %vm1037_vm5 = vcmask 261120   ;;  %s4828_s0 = scalar_lea.vmem %s4766_s8, %s4298_s26  ;;  %s4829_s30 = scalar_lea.vmem %s4767_s9, %s4298_s26  ;;  %v1156_v39 = vlaneseq }
 0x106   : > { %3945 = vmatprep.subr.bf16.mxu1 %v4151_v17  ;;  %3961 = vmatprep.subr.bf16.mxu0 %v4151_v17  ;;  %v4070_v21 = vld [vmem:[%s4319_s27 + $0x8] sm:$0xff]   ;;  %v4071_v23 = vld [vmem:[%s4319_s27] sm:$0xff]   ;;  %s4153_s27 = smov 112   ;;  %v4154_v37 = vmov 1983009808   ;;  %s4157_s19 = smov 96  }
 0x107   : > { %3946 = vmatpush3.bf16.msra.mxu1 %v4068_v16  ;;  %3949 = vmatprep.mubr.msk.bf16.mxu1 %vm4152_vm4, %v4151_v17  ;;  %v1012_v20 = vld [vmem:[#allocation2 + $0x8] sm:$0xf]  ;;  %v3864_v24 = vld [vmem:[%s4828_s0] ss:$0 sm:$0xff]  ;;  %v1154_v38 = vunpack.c.l.s4 %v4154_v37  ;;  %v1157_v41 = vshrl.u32 %v1156_v39, 7  ;;  %vm2151_vm6 = vcmask 130048  }
 0x108   : > { %3947 = vmatprep.subr.bf16.mxu1 %v4151_v17  ;;  %3963 = vmatprep.mubr.msk.bf16.mxu0 %vm4152_vm4, %v4151_v17  ;;  %v3868_v31 = vld [vmem:[%s4829_s30] ss:$0 sm:$0xff]  ;;  %v4155_v42 = vmov 1934713408   ;;  %vm2244_vm7 = vcmask 64512   ;;  %vm2248_vm8 = vcmask 60416  }
 0x109   : > { %v1155_v40 = vunpack.c.0.s8 %v1154_v38  ;;  %v1185_v43 = vunpack.c.l.s4 %v4155_v42  ;;  %s4830_s12 = sld [smem:[#allocation20_spill]]  ;;  %vm3364_vm9 = vcmask 257024   ;;  %vm3523_vm10 = vcmask 523264  }
 0x10a   : > { %s4832_s11 = sld [smem:[#allocation9_spill]] }
 0x10b   : > { %v1011_v19 = vld [vmem:[#allocation2] sm:$0xff]  ;;  %3948 = vmatpush3.bf16.msra.mxu1 %v4069_v18  ;;  %v4427_v44 = vsub.s32 %v1155_v40, %v1157_v41  ;;  %v1186_v45 = vunpack.c.0.s8 %v1185_v43  ;;  %s4833_s14 = sld [smem:[#allocation10_spill]] }
 0x10c   : > { %v1013_v22 = vpack.c.bf16 %v1012_v20, %v1011_v19  ;;  %3953 = vmatprep.subr.bf16.mxu1 %v4151_v17  ;;  %s4835_s25 = sld [smem:[#allocation22_spill]] }
 0x10d   : > { %v4435_v49 = vsub.s32 %v1186_v45, %v1157_v41  ;;  %s4840_s23 = sld [smem:[#allocation3_spill]] }
 0x10e   : > { %3950 = vmatmul.mubr.msk.bf16.vlgmr.msra.gmra.mxu1 %vm1037_vm5, %v1013_v22 }
 0x10f   : > { %3954 = vmatpush3.bf16.msra.mxu1 %v4070_v21  ;;  %3957 = vmatprep.mubr.msk.bf16.mxu1 %vm4152_vm4, %v4151_v17  ;;  %s4831_s7 = scalar_lea.vmem %s4830_s12, %s4298_s26 }
 0x110   : > { %3955 = vmatprep.subr.bf16.mxu1 %v4151_v17 }
 0x112   : > { %s4836_s18 = scalar_lea.vmem %s4835_s25, %s4298_s26 }
 0x113   : > { %3956 = vmatpush3.bf16.msra.mxu1 %v4071_v23  ;;  %p3903_p8 = scmp.ne.s32.totalorder %s4840_s23, 1 }
 0x114   : > { %3967 = vmatprep.subr.bf16.mxu1 %v4151_v17 }
 0x116   : > { %3958 = vmatmul.mubr.msk.bf16.vlgmr.msra.gmra.mxu1 %vm1037_vm5, %v1013_v22 }
 0x117   : > { %3969 = vmatprep.mubr.msk.bf16.mxu1 %vm4152_vm4, %v4151_v17 }
 0x1ce   : > { %v1075_v25 = vpop.f32.mrf.mxu1 }
 0x1cf   : > { %v4412_v26 = vadd.f32 %v3864_v24, %v1075_v25 }
 0x1d0   : > { %v3951_v27 = vpop.f32.mrf.mxu1 }
 0x1d1   : > { %1147 = vrot.lane.b32.xlu1 %v4412_v26, %s4153_s27 }
 0x1d2   : > { %v1078_v28 = vpop.f32.mrf.mxu1 }
 0x1d3   : > { %v4416_v29 = vadd.f32 %v3864_v24, %v1078_v28 }
 0x1d4   : > { %v3952_v30 = vpop.f32.mrf.mxu1 }
 0x1d6   : > { %v1139_v32 = vpop.f32.mrf.mxu1 }
 0x1d7   : > { %v4423_v33 = vadd.f32 %v3868_v31, %v1139_v32 }
 0x1d8   : > { %v3959_v34 = vpop.f32.mrf.mxu1 }
 0x1d9   : > { %1260 = vrot.lane.b32.xlu0 %v4423_v33, %s4153_s27  ;;  %v1270_v48 = vrot.slane %v4423_v33, %v4427_v44  ;;  %v1263_v53 = vcombine.high %v4423_v33, %v4151_v17 }
 0x1da   : > { %v1142_v35 = vpop.f32.mrf.mxu1 }
 0x1db   : > { %v1277_v60 = vrot.slane %v1263_v53, %v4427_v44 }
 0x1dc   : > { %v3960_v36 = vpop.f32.mrf.mxu1 }
 0x243   : > { %v4453_v10 = vpop.permute.xlu1 %1147 }
 0x24b   : > { %v4429_v46 = vpop.permute.xlu0 %1260 }
 0x24c   : > { %v1285_v47 = vrot.slane %v4429_v46, %v4427_v44  ;;  %v1278_v50 = vcombine.high %v4429_v46, %v4151_v17 }
 0x24e   : > { %v1294_v51 = vcombine.high %v1270_v48, %v1285_v47  ;;  %v1293_v52 = vcombine.low %v1270_v48, %v1285_v47  ;;  %v1292_v56 = vrot.slane %v1278_v50, %v4427_v44 }
 0x250   : > { %v1308_v54 = vrot.slane %v1294_v51, %v4435_v49  ;;  %v1301_v55 = vrot.slane %v1293_v52, %v4435_v49  ;;  %v1309_v63 = vcombine.low %v1277_v60, %v1292_v56  ;;  %v1310_v2 = vcombine.high %v1277_v60, %v1292_v56 }
 0x252   : > { %v1331_v57 = vpack.c.bf16 %v1308_v54, %v1308_v54  ;;  %v1329_v58 = vpack.c.bf16 %v1301_v55, %v1301_v55  ;;  %v1325_v59 = vcombine.high %v1301_v55, %v4151_v17  ;;  %v1326_v62 = vcombine.high %v1308_v54, %v4151_v17 }
 0x253   : > { %v1317_v1 = vrot.slane %v1309_v63, %v4435_v49  ;;  %v1324_v4 = vrot.slane %v1310_v2, %v4435_v49 }
 0x254   : > { %1525 = vxpose.xlu1.c.b16.start.end [1/1] (short) (narrow) %v1331_v57, 16  ;;  %1493 = vxpose.xlu0.c.b16.start.end [1/1] (short) (narrow) %v1329_v58, 16  ;;  %v1330_v61 = vpack.c.bf16 %v1325_v59, %v1325_v59  ;;  %v1332_v0 = vpack.c.bf16 %v1326_v62, %v1326_v62 }
 0x255   : > { %v1333_v3 = vpack.c.bf16 %v1317_v1, %v1317_v1  ;;  %v1335_v5 = vpack.c.bf16 %v1324_v4, %v1324_v4  ;;  %v1327_v6 = vcombine.high %v1317_v1, %v4151_v17  ;;  %v1328_v8 = vcombine.high %v1324_v4, %v4151_v17 }
 0x257   : > { %v1334_v7 = vpack.c.bf16 %v1327_v6, %v1327_v6  ;;  %v1336_v9 = vpack.c.bf16 %v1328_v8, %v1328_v8 }
 0x258   : > { %1509 = vxpose.xlu1.c.b16.start.end [1/1] (short) (narrow) %v1330_v61, 16 }
 0x25c   : > { %1541 = vxpose.xlu1.c.b16.start.end [1/1] (short) (narrow) %v1332_v0, 16 }
 0x260   : > { %1557 = vxpose.xlu1.c.b16.start.end [1/1] (short) (narrow) %v1333_v3, 16 }
 0x264   : > { %1589 = vxpose.xlu1.c.b16.start.end [1/1] (short) (narrow) %v1335_v5, 16 }
 0x268   : > { %1573 = vxpose.xlu1.c.b16.start.end [1/1] (short) (narrow) %v1334_v7, 16  ;;  %v4156_v7 = vmov 0  }
 0x26c   : > { %1605 = vxpose.xlu1.c.b16.start.end [1/1] (short) (narrow) %v1336_v9, 16 }
 0x270   : > { %1149 = vrot.lane.b32.xlu1 %v4416_v29, %s4153_s27  ;;  %s4837_s27 = scalar_lea.vmem %s4773_s15, %s4298_s26 }
 0x2b6   : > { %v1533_v11 = vpop.trf.xlu1  ;;  %v1501_v16 = vpop.trf.xlu0 }
 0x2b7   : > { %v1625_v18 = vshrl.u32 %v1501_v16, 16  ;;  %v1633_v28 = vshrl.u32 %v1533_v11, 16 }
 0x2ba   : > { %v1517_v12 = vpop.trf.xlu1 }
 0x2bb   : > { %v1626_v19 = vshrl.u32 %v1517_v12, 16  ;;  %v1623_v24 = vpack.i.b16 %v1517_v12, %v1501_v16 }
 0x2bd   : > { %v1627_v30 = vpack.i.b16 %v1626_v19, %v1625_v18 }
 0x2be   : > { %v1549_v13 = vpop.trf.xlu1 }
 0x2bf   : > { %v1634_v25 = vshrl.u32 %v1549_v13, 16  ;;  %v1631_v34 = vpack.i.b16 %v1549_v13, %v1533_v11 }
 0x2c1   : > { %v1635_v38 = vpack.i.b16 %v1634_v25, %v1633_v28  ;;  %v1167_v28 = vcombine.high %v4453_v10, %v4151_v17 }
 0x2c2   : > { %v1565_v14 = vpop.trf.xlu1 }
 0x2c3   : > { %v1641_v21 = vshrl.u32 %v1565_v14, 16 }
 0x2c6   : > { %v1597_v15 = vpop.trf.xlu1 }
 0x2c7   : > { %v1649_v35 = vshrl.u32 %v1597_v15, 16 }
 0x2ca   : > { %v1581_v20 = vpop.trf.xlu1 }
 0x2cb   : > { %v1639_v22 = vpack.i.b16 %v1581_v20, %v1565_v14  ;;  %v1642_v23 = vshrl.u32 %v1581_v20, 16 }
 0x2cd   : > { %v1643_v27 = vpack.i.b16 %v1642_v23, %v1641_v21  ;;  %v1653_v31 = vcombine.low %v1623_v24, %v1639_v22  ;;  %v1654_v51 = vcombine.high %v1623_v24, %v1639_v22 }
 0x2ce   : > { %v1613_v32 = vpop.trf.xlu1 }
 0x2cf   : > { %v1647_v36 = vpack.i.b16 %v1613_v32, %v1597_v15  ;;  %v1650_v37 = vshrl.u32 %v1613_v32, 16  ;;  %v1721_v39 = vcombine.low %v1627_v30, %v1643_v27  ;;  %v1722_v42 = vcombine.high %v1627_v30, %v1643_v27 }
 0x2d0   : > { %v1661_v43 = vrot.slane %v1653_v31, %v4427_v44  ;;  %v1668_v63 = vrot.slane %v1654_v51, %v4427_v44  ;;  %v1152_v30 = vcombine.high %v4412_v26, %v4151_v17 }
 0x2d1   : > { %v1651_v40 = vpack.i.b16 %v1650_v37, %v1649_v35  ;;  %v1669_v41 = vcombine.low %v1631_v34, %v1647_v36  ;;  %v1670_v45 = vcombine.high %v1631_v34, %v1647_v36  ;;  %v1729_v52 = vrot.slane %v1721_v39, %v4427_v44 }
 0x2d2   : > { %v1736_v56 = vrot.slane %v1722_v42, %v4427_v44  ;;  %v1166_v34 = vrot.slane %v1152_v30, %v4427_v44  ;;  %v1174_v35 = vrot.slane %v4453_v10, %v4427_v44  ;;  %v1159_v37 = vrot.slane %v4412_v26, %v4427_v44 }
 0x2d3   : > { %v1737_v47 = vcombine.low %v1635_v38, %v1651_v40  ;;  %v1738_v48 = vcombine.high %v1635_v38, %v1651_v40  ;;  %v1677_v50 = vrot.slane %v1669_v41, %v4427_v44  ;;  %v1684_v60 = vrot.slane %v1670_v45, %v4427_v44 }
 0x2d4   : > { %v1182_v40 = vcombine.low %v1159_v37, %v1174_v35  ;;  %v1183_v41 = vcombine.high %v1159_v37, %v1174_v35 }
 0x2d5   : > { %v1745_v53 = vrot.slane %v1737_v47, %v4427_v44  ;;  %v1685_v54 = vcombine.low %v1661_v43, %v1677_v50  ;;  %v1752_v55 = vrot.slane %v1738_v48, %v4427_v44  ;;  %v1686_v59 = vcombine.high %v1661_v43, %v1677_v50 }
 0x2d6   : > { %v1701_v2 = vcombine.low %v1668_v63, %v1684_v60  ;;  %v1702_v6 = vcombine.high %v1668_v63, %v1684_v60  ;;  %v1224_v47 = vrot.slane %v4416_v29, %v4427_v44  ;;  %v1190_v10 = vrot.slane %v1182_v40, %v4435_v49 }
 0x2d7   : > { %v1693_v57 = vrot.slane %v1685_v54, %v4435_v49  ;;  %v1753_v58 = vcombine.low %v1729_v52, %v1745_v53  ;;  %v1770_v62 = vcombine.high %v1736_v56, %v1752_v55  ;;  %v1769_v0 = vcombine.low %v1736_v56, %v1752_v55 }
 0x2d8   : > { %v1700_v1 = vrot.slane %v1686_v59, %v4435_v49  ;;  %v1709_v5 = vrot.slane %v1701_v2, %v4435_v49  ;;  %v1716_v9 = vrot.slane %v1702_v6, %v4435_v49  ;;  %v1754_v13 = vcombine.high %v1729_v52, %v1745_v53 }
 0x2d9   : > { %1789 = vxpose.xlu0.c.b16.start.end [1/1] (short) (narrow) %v1693_v57, 16  ;;  %v1761_v61 = vrot.slane %v1753_v58, %v4435_v49  ;;  %v1784_v3 = vrot.slane %v1770_v62, %v4435_v49  ;;  %v1777_v4 = vrot.slane %v1769_v0, %v4435_v49  ;;  %v1717_v12 = vcombine.high %v1693_v57, %v4156_v7 }
 0x2da   : > { %v1768_v14 = vrot.slane %v1754_v13, %v4435_v49  ;;  %v1718_v15 = vcombine.high %v1700_v1, %v4156_v7  ;;  %v1719_v16 = vcombine.high %v1709_v5, %v4156_v7  ;;  %v1720_v20 = vcombine.high %v1716_v9, %v4156_v7 }
 0x2db   : > { %1805 = vxpose.xlu1.c.b16.start.end [1/1] (short) (narrow) %v1761_v61, 16  ;;  %v1787_v8 = vcombine.high %v1777_v4, %v4156_v7  ;;  %v1788_v11 = vcombine.high %v1784_v3, %v4156_v7  ;;  %v1785_v18 = vcombine.high %v1761_v61, %v4156_v7  ;;  %v1197_v51 = vrot.slane %v1183_v41, %v4435_v49 }
 0x2dc   : > { %v1786_v19 = vcombine.high %v1768_v14, %v4156_v7  ;;  %v1214_v57 = vcombine.high %v1190_v10, %v4151_v17 }
 0x2dd   : > { %1853 = vxpose.xlu0.c.b16.start.end [1/1] (short) (narrow) %v1700_v1, 16  ;;  %v1215_v29 = vcombine.high %v1197_v51, %v4151_v17 }
 0x2df   : > { %1997 = vxpose.xlu1.c.b16.start.end [1/1] (short) (narrow) %v1784_v3, 16 }
 0x2e1   : > { %1917 = vxpose.xlu0.c.b16.start.end [1/1] (short) (narrow) %v1709_v5, 16 }
 0x2e2   : > { %v1150_v23 = vpop.permute.xlu1 %1149 }
 0x2e3   : > { %1965 = vxpose.xlu1.c.b16.start.end [1/1] (short) (narrow) %v1787_v8, 16  ;;  %v1232_v42 = vrot.slane %v1150_v23, %v4427_v44 }
 0x2e5   : > { %1981 = vxpose.xlu0.c.b16.start.end [1/1] (short) (narrow) %v1716_v9, 16  ;;  %v1233_v26 = vcombine.low %v1224_v47, %v1232_v42  ;;  %v1234_v52 = vcombine.high %v1224_v47, %v1232_v42 }
 0x2e7   : > { %2029 = vxpose.xlu1.c.b16.start.end [1/1] (short) (narrow) %v1788_v11, 16  ;;  %v1241_v58 = vrot.slane %v1233_v26, %v4435_v49  ;;  %v1248_v59 = vrot.slane %v1234_v52, %v4435_v49 }
 0x2e9   : > { %1821 = vxpose.xlu0.c.b16.start.end [1/1] (short) (narrow) %v1717_v12, 16  ;;  %v1249_v5 = vcombine.high %v1241_v58, %v4151_v17  ;;  %v1250_v6 = vcombine.high %v1248_v59, %v4151_v17 }
 0x2eb   : > { %1339 = vrot.lane.b32.xlu1 %v4429_v46, %s4157_s19  ;;  %v3877_v23 = vpack.c.bf16 %v1250_v6, %v1249_v5 }
 0x2ed   : > { %1869 = vxpose.xlu0.c.b16.start.end [1/1] (short) (narrow) %v1768_v14, 16  ;;  %v1485_v37 = vrot.slane %v3877_v23, %v4435_v49 }
 0x2f1   : > { %1885 = vxpose.xlu0.c.b16.start.end [1/1] (short) (narrow) %v1718_v15, 16 }
 0x2f5   : > { %1933 = vxpose.xlu0.c.b16.start.end [1/1] (short) (narrow) %v1777_v4, 16 }
 0x2f9   : > { %1949 = vxpose.xlu0.c.b16.start.end [1/1] (short) (narrow) %v1719_v16, 16 }
 0x2fd   : > { %1837 = vxpose.xlu0.c.b16.start.end [1/1] (short) (narrow) %v1785_v18, 16 }
 0x301   : > { %1901 = vxpose.xlu0.c.b16.start.end [1/1] (short) (narrow) %v1786_v19, 16 }
 0x305   : > { %2013 = vxpose.xlu0.c.b16.start.end [1/1] (short) (narrow) %v1720_v20, 16 }
 0x30e   : > { %1337 = vrot.lane.b32.xlu0 %v4423_v33, %s4157_s19  ;;  %v1181_v33 = vrot.slane %v1167_v28, %v4427_v44 }
 0x310   : > { %v1198_v38 = vcombine.low %v1166_v34, %v1181_v33  ;;  %v1199_v39 = vcombine.high %v1166_v34, %v1181_v33  ;;  %v3874_v33 = vpack.c.bf16 %v1248_v59, %v1241_v58 }
 0x312   : > { %v1206_v48 = vrot.slane %v1198_v38, %v4435_v49  ;;  %v1213_v50 = vrot.slane %v1199_v39, %v4435_v49  ;;  %v1450_v40 = vrot.slane %v3874_v33, %v4435_v49 }
 0x314   : > { %v1216_v54 = vcombine.high %v1206_v48, %v4151_v17  ;;  %v1217_v55 = vcombine.high %v1213_v50, %v4151_v17  ;;  %v3872_v3 = vpack.c.bf16 %v1206_v48, %v1190_v10  ;;  %v3873_v4 = vpack.c.bf16 %v1213_v50, %v1197_v51 }
 0x316   : > { %v3875_v63 = vpack.c.bf16 %v1216_v54, %v1214_v57  ;;  %v3876_v0 = vpack.c.bf16 %v1217_v55, %v1215_v29 }
 0x318   : > { %v1459_v14 = vrot.slane %v3875_v63, %v4427_v44  ;;  %v1467_v15 = vrot.slane %v3876_v0, %v4427_v44 }
 0x33b   : > { %v4481_v46 = vpop.trf.xlu0 }
 0x33d   : > { %v1813_v27 = vpop.trf.xlu1 }
 0x33f   : > { %v4483_v21 = vpop.trf.xlu0 }
 0x340   : > { %v2045_v9 = vcombine.low %v4481_v46, %v4483_v21  ;;  %v1424_v46 = vrot.slane %v3872_v3, %v4427_v44  ;;  %v1432_v21 = vrot.slane %v3873_v4, %v4427_v44 }
 0x341   : > { %v2005_v32 = vpop.trf.xlu1 }
 0x343   : > { %v4485_v22 = vpop.trf.xlu0 }
 0x345   : > { %v1973_v43 = vpop.trf.xlu1 }
 0x347   : > { %v4487_v24 = vpop.trf.xlu0 }
 0x348   : > { %v2061_v16 = vcombine.low %v4485_v22, %v4487_v24 }
 0x349   : > { %v2037_v56 = vpop.trf.xlu1 }
 0x34a   : > { %v2118_v62 = vcombine.low %v1973_v43, %v2037_v56  ;;  %v2068_v22 = vrot.slane %v2061_v16, %v4427_v44 }
 0x34b   : > { %v1829_v25 = vpop.trf.xlu0 }
 0x34c   : > { %v2125_v12 = vrot.slane %v2118_v62, %v4427_v44 }
 0x34f   : > { %v1877_v31 = vpop.trf.xlu0 }
 0x350   : > { %v2094_v1 = vcombine.low %v1813_v27, %v1877_v31  ;;  %v2052_v27 = vrot.slane %v2045_v9, %v4427_v44 }
 0x352   : > { %v2101_v18 = vrot.slane %v2094_v1, %v4427_v44 }
 0x353   : > { %v1893_v36 = vpop.trf.xlu0 }
 0x354   : > { %v2053_v2 = vcombine.low %v1829_v25, %v1893_v36  ;;  %v1435_v36 = vcombine.low %v1424_v46, %v1432_v21 }
 0x356   : > { %v2060_v19 = vrot.slane %v2053_v2, %v4427_v44  ;;  %v1442_v47 = vrot.slane %v1435_v36, %v4435_v49 }
 0x357   : > { %v1941_v45 = vpop.trf.xlu0 }
 0x358   : > { %v2110_v61 = vcombine.low %v1941_v45, %v2005_v32  ;;  %v1470_v32 = vcombine.low %v1459_v14, %v1467_v15  ;;  %v2077_v24 = vcombine.low %v2052_v27, %v2060_v19  ;;  %v1451_v10 = vcombine.low %v1442_v47, %v1450_v40 }
 0x35a   : > { %v2117_v11 = vrot.slane %v2110_v61, %v4427_v44  ;;  %v1477_v41 = vrot.slane %v1470_v32, %v4435_v49  ;;  %v2084_v42 = vrot.slane %v2077_v24, %v4435_v49  ;;  %v1490_v56 = vshrl.u32 %v1451_v10, 16 }
 0x35b   : > { %v1957_v53 = vpop.trf.xlu0 }
 0x35c   : > { %v2134_v28 = vcombine.low %v2117_v11, %v2125_v12  ;;  %v1486_v48 = vcombine.low %v1477_v41, %v1485_v37 }
 0x35d   : > { %v1340_v29 = vpop.permute.xlu1 %1339 }
 0x35e   : > { %v2141_v39 = vrot.slane %v2134_v28, %v4435_v49  ;;  %v1489_v55 = vpack.i.b16 %v1486_v48, %v1451_v10  ;;  %v1358_v58 = vcombine.high %v1340_v29, %v4151_v17 }
 0x35f   : > { %v1845_v60 = vpop.trf.xlu0 }
 0x360   : > { %v1372_v63 = vrot.slane %v1358_v58, %v4427_v44 }
 0x363   : > { %v1909_v8 = vpop.trf.xlu0 }
 0x364   : > { %v2102_v13 = vcombine.low %v1845_v60, %v1909_v8  ;;  %v1365_v60 = vrot.slane %v1340_v29, %v4427_v44 }
 0x366   : > { %v2109_v20 = vrot.slane %v2102_v13, %v4427_v44 }
 0x367   : > { %v2021_v25 = vpop.trf.xlu0 }
 0x368   : > { %v2126_v30 = vcombine.low %v2101_v18, %v2109_v20  ;;  %v2069_v31 = vcombine.low %v1957_v53, %v2021_v25  ;;  %v1491_v53 = vshrl.u32 %v1486_v48, 16 }
 0x36a   : > { %v2076_v34 = vrot.slane %v2069_v31, %v4427_v44  ;;  %v2133_v35 = vrot.slane %v2126_v30, %v4435_v49  ;;  %v1492_v57 = vpack.i.b16 %v1491_v53, %v1490_v56 }
 0x36c   : > { %v2085_v38 = vcombine.low %v2068_v22, %v2076_v34  ;;  %v2142_v45 = vcombine.low %v2133_v35, %v2141_v39 }
 0x36e   : > { %v2092_v43 = vrot.slane %v2085_v38, %v4435_v49  ;;  %v2148_v52 = vshrl.u32 %v2142_v45, 16 }
 0x370   : > { %v2093_v50 = vcombine.low %v2084_v42, %v2092_v43 }
 0x372   : > { %v2145_v51 = vpack.i.b16 %v2142_v45, %v2093_v50  ;;  %v2147_v26 = vshrl.u32 %v2093_v50, 16 }
 0x374   : > { %3962 = vmatpush3.bf16.msra.mxu0 %v2145_v51  ;;  %v2149_v54 = vpack.i.b16 %v2148_v52, %v2147_v26 }
 0x375   : > { %3973 = vmatprep.subr.bf16.mxu0 %v4151_v17 }
 0x376   : > { %3968 = vmatpush3.bf16.msra.mxu1 %v2149_v54 }
 0x377   : > { %3964 = vmatmul.mubr.msk.bf16.vlgmr.msra.gmra.mxu0 %vm2151_vm6, %v1489_v55  ;;  %3979 = vmatprep.subr.bf16.mxu1 %v4151_v17 }
 0x378   : > { %3975 = vmatprep.mubr.msk.bf16.mxu0 %vm4152_vm4, %v4151_v17 }
 0x379   : > { %3970 = vmatmul.mubr.msk.bf16.vlgmr.msra.gmra.mxu1 %vm2151_vm6, %v1492_v57 }
 0x37a   : > { %3981 = vmatprep.mubr.msk.bf16.mxu1 %vm4152_vm4, %v4151_v17 }
 0x380   : > { %v1338_v59 = vpop.permute.xlu0 %1337 }
 0x381   : > { %v1343_v61 = vcombine.high %v1338_v59, %v4151_v17  ;;  %v1350_v62 = vrot.slane %v1338_v59, %v4427_v44 }
 0x383   : > { %v1357_v0 = vrot.slane %v1343_v61, %v4427_v44  ;;  %v1373_v1 = vcombine.low %v1350_v62, %v1365_v60  ;;  %v1374_v2 = vcombine.high %v1350_v62, %v1365_v60 }
 0x385   : > { %v1381_v3 = vrot.slane %v1373_v1, %v4435_v49  ;;  %v1388_v4 = vrot.slane %v1374_v2, %v4435_v49  ;;  %v1390_v5 = vcombine.high %v1357_v0, %v1372_v63  ;;  %v1389_v6 = vcombine.low %v1357_v0, %v1372_v63 }
 0x387   : > { %v1411_v8 = vpack.c.bf16 %v1388_v4, %v1388_v4  ;;  %v1409_v9 = vpack.c.bf16 %v1381_v3, %v1381_v3  ;;  %v1406_v11 = vcombine.high %v1388_v4, %v4151_v17  ;;  %v1405_v12 = vcombine.high %v1381_v3, %v4151_v17 }
 0x388   : > { %v1397_v13 = vrot.slane %v1389_v6, %v4435_v49  ;;  %v1404_v37 = vrot.slane %v1390_v5, %v4435_v49 }
 0x389   : > { %2324 = vxpose.xlu0.c.b16.start.end [1/1] (short) (narrow) %v1411_v8, 16  ;;  %2292 = vxpose.xlu1.c.b16.start.end [1/1] (short) (narrow) %v1409_v9, 16  ;;  %v1412_v14 = vpack.c.bf16 %v1406_v11, %v1406_v11  ;;  %v1410_v15 = vpack.c.bf16 %v1405_v12, %v1405_v12 }
 0x38a   : > { %v1407_v16 = vcombine.high %v1397_v13, %v4151_v17  ;;  %v1413_v18 = vpack.c.bf16 %v1397_v13, %v1397_v13  ;;  %v1415_v38 = vpack.c.bf16 %v1404_v37, %v1404_v37  ;;  %v1408_v39 = vcombine.high %v1404_v37, %v4151_v17 }
 0x38c   : > { %v1414_v19 = vpack.c.bf16 %v1407_v16, %v1407_v16  ;;  %v1416_v40 = vpack.c.bf16 %v1408_v39, %v1408_v39 }
 0x38d   : > { %2340 = vxpose.xlu1.c.b16.start.end [1/1] (short) (narrow) %v1412_v14, 16  ;;  %2308 = vxpose.xlu0.c.b16.start.end [1/1] (short) (narrow) %v1410_v15, 16 }
 0x391   : > { %2356 = vxpose.xlu0.c.b16.start.end [1/1] (short) (narrow) %v1413_v18, 16  ;;  %2372 = vxpose.xlu1.c.b16.start.end [1/1] (short) (narrow) %v1414_v19, 16 }
 0x3eb   : > { %v2332_v41 = vpop.trf.xlu0  ;;  %v2300_v42 = vpop.trf.xlu1 }
 0x3ec   : > { %v2424_v26 = vshrl.u32 %v2300_v42, 16  ;;  %v2432_v58 = vshrl.u32 %v2332_v41, 16 }
 0x3ef   : > { %v2316_v43 = vpop.trf.xlu0  ;;  %v2348_v45 = vpop.trf.xlu1 }
 0x3f0   : > { %v2425_v52 = vshrl.u32 %v2316_v43, 16  ;;  %v2422_v55 = vpack.i.b16 %v2316_v43, %v2300_v42  ;;  %v2433_v59 = vshrl.u32 %v2348_v45, 16  ;;  %v2430_v1 = vpack.i.b16 %v2348_v45, %v2332_v41 }
 0x3f2   : > { %v2426_v60 = vpack.i.b16 %v2425_v52, %v2424_v26  ;;  %v2434_v4 = vpack.i.b16 %v2433_v59, %v2432_v58 }
 0x3f3   : > { %v2364_v47 = vpop.trf.xlu0  ;;  %v2380_v48 = vpop.trf.xlu1 }
 0x3f4   : > { %v2440_v53 = vshrl.u32 %v2364_v47, 16  ;;  %v2441_v54 = vshrl.u32 %v2380_v48, 16  ;;  %v2438_v56 = vpack.i.b16 %v2380_v48, %v2364_v47 }
 0x3f6   : > { %v2442_v61 = vpack.i.b16 %v2441_v54, %v2440_v53  ;;  %v2452_v63 = vcombine.low %v2422_v55, %v2438_v56  ;;  %v2453_v5 = vcombine.high %v2422_v55, %v2438_v56 }
 0x3f8   : > { %v2520_v6 = vcombine.low %v2426_v60, %v2442_v61  ;;  %v2460_v12 = vrot.slane %v2452_v63, %v4427_v44  ;;  %v2521_v18 = vcombine.high %v2426_v60, %v2442_v61  ;;  %v2467_v19 = vrot.slane %v2453_v5, %v4427_v44 }
 0x437   : > { %v2189_v20 = vpop.f32.mrf.mxu0 }
 0x438   : > { %v4558_v46 = vmul.f32 0.25, %v2189_v20 }
 0x439   : > { %v3965_v21 = vpop.f32.mrf.mxu0  ;;  %v2233_v23 = vpop.f32.mrf.mxu1 }
 0x43a   : > { %v4560_v25 = vmul.f32 0.25, %v2233_v23  ;;  %v2245_v27 = vsel %vm2244_vm7, %v4558_v46, -inf  ;;  %v2528_v21 = vrot.slane %v2520_v6, %v4427_v44 }
 0x43b   : > { %v2192_v28 = vpop.f32.mrf.mxu0  ;;  %2246 = vmax.xlane.f32.xlu0 %v2245_v27  ;;  %v3971_v30 = vpop.f32.mrf.mxu1 }
 0x43c   : > { %v4564_v31 = vmul.f32 0.25, %v2192_v28  ;;  %v2252_v34 = vsel %vm2244_vm7, %v4560_v25, -inf }
 0x43d   : > { %v3966_v33 = vpop.f32.mrf.mxu0  ;;  %v2236_v32 = vpop.f32.mrf.mxu1 }
 0x43e   : > { %v4566_v22 = vmul.f32 0.25, %v2236_v32  ;;  %v2249_v24 = vsel %vm2248_vm8, %v4564_v31, -inf  ;;  %v2535_v32 = vrot.slane %v2521_v18, %v4427_v44 }
 0x43f   : > { %2250 = vmax.xlane.f32.xlu1 %v2249_v24  ;;  %2253 = vmax.xlane.f32.xlu0 %v2252_v34  ;;  %v3972_v35 = vpop.f32.mrf.mxu1 }
 0x440   : > { %v2255_v36 = vsel %vm2248_vm8, %v4566_v22, -inf }
 0x443   : > { %2256 = vmax.xlane.f32.xlu1 %v2255_v36 }
 0x46c   : > { %2388 = vxpose.xlu0.c.b16.start.end [1/1] (short) (narrow) %v1415_v38, 16 }
 0x470   : > { %2404 = vxpose.xlu1.c.b16.start.end [1/1] (short) (narrow) %v1416_v40, 16 }
 0x4c4   : > { %v2247_v50 = vpop.xlane.xlu0 %2246 }
 0x4c5   : > { %v2258_v40 = vsub.f32 %v4558_v46, %v2247_v50 }
 0x4c7   : > { %v2262_v47 = vmul.f32 1.442695, %v2258_v40 }
 0x4c8   : > { %v4576_v10 = vpop.xlane.xlu1 %2250  ;;  %v4578_v51 = vpop.xlane.xlu0 %2253 }
 0x4c9   : > { %v2259_v42 = vsub.f32 %v4564_v31, %v4576_v10  ;;  %v2260_v48 = vsub.f32 %v4560_v25, %v4578_v51  ;;  %4080 = vpow2.f32 %v2262_v47 }
 0x4cb   : > { %v2264_v46 = vmul.f32 1.442695, %v2259_v42  ;;  %v2266_v10 = vmul.f32 1.442695, %v2260_v48 }
 0x4cc   : > { %v4580_v57 = vpop.xlane.xlu1 %2256 }
 0x4cd   : > { %v2261_v50 = vsub.f32 %v4566_v22, %v4580_v57  ;;  %4082 = vpow2.f32 %v2264_v46 }
 0x4ce   : > { %v2396_v29 = vpop.trf.xlu0  ;;  %4084 = vpow2.f32 %v2266_v10 }
 0x4cf   : > { %v2448_v62 = vshrl.u32 %v2396_v29, 16  ;;  %v2268_v54 = vmul.f32 1.442695, %v2261_v50 }
 0x4d1   : > { %4086 = vpow2.f32 %v2268_v54 }
 0x4d2   : > { %v2412_v0 = vpop.trf.xlu1 }
 0x4d3   : > { %v2446_v2 = vpack.i.b16 %v2412_v0, %v2396_v29  ;;  %v2449_v3 = vshrl.u32 %v2412_v0, 16 }
 0x4d5   : > { %v2450_v8 = vpack.i.b16 %v2449_v3, %v2448_v62  ;;  %v2468_v9 = vcombine.low %v2430_v1, %v2446_v2  ;;  %v2469_v11 = vcombine.high %v2430_v1, %v2446_v2 }
 0x4d6   : > { %v4081_v22 = vpop.eup %4080 }
 0x4d7   : > { %v2536_v13 = vcombine.low %v2434_v4, %v2450_v8  ;;  %v2537_v14 = vcombine.high %v2434_v4, %v2450_v8  ;;  %v2476_v15 = vrot.slane %v2468_v9, %v4427_v44  ;;  %v4585_v16 = vrot.slane %v2469_v11, %v4427_v44 }
 0x4d8   : > { %v2270_v56 = vsel %vm2244_vm7, %v4081_v22, 0.0 }
 0x4d9   : > { %v2484_v20 = vcombine.low %v2460_v12, %v2476_v15  ;;  %v2544_v23 = vrot.slane %v2536_v13, %v4427_v44  ;;  %v2551_v27 = vrot.slane %v2537_v14, %v4427_v44  ;;  %v2501_v28 = vcombine.high %v2467_v19, %v4585_v16 }
 0x4da   : > { %v2485_v36 = vcombine.high %v2460_v12, %v2476_v15  ;;  %v2500_v45 = vcombine.low %v2467_v19, %v4585_v16  ;;  %v4083_v55 = vpop.eup %4082 }
 0x4db   : > { %v2492_v30 = vrot.slane %v2484_v20, %v4435_v49  ;;  %v2552_v33 = vcombine.low %v2528_v21, %v2544_v23  ;;  %v2569_v34 = vcombine.high %v2535_v32, %v2551_v27  ;;  %v2553_v38 = vcombine.high %v2528_v21, %v2544_v23  ;;  %v4614_v57 = vpop.eup %4084 }
 0x4dc   : > { %v2499_v39 = vrot.slane %v2485_v36, %v4435_v49  ;;  %v2568_v52 = vcombine.low %v2535_v32, %v2551_v27  ;;  %v2508_v31 = vrot.slane %v2500_v45, %v4435_v49  ;;  %v2273_v29 = vsel %vm2248_vm8, %v4083_v55, 0.0 }
 0x4dd   : > { %2588 = vxpose.xlu0.c.b16.start.end [1/1] (short) (narrow) %v2492_v30, 16  ;;  %v2560_v24 = vrot.slane %v2552_v33, %v4435_v49  ;;  %v2516_v35 = vcombine.high %v2492_v30, %v4156_v7  ;;  %v2567_v41 = vrot.slane %v2553_v38, %v4435_v49  ;;  %v2276_v59 = vsel %vm2244_vm7, %v4614_v57, 0.0 }
 0x4de   : > { %v2517_v43 = vcombine.high %v2499_v39, %v4156_v7  ;;  %v2576_v53 = vrot.slane %v2568_v52, %v4435_v49  ;;  %v2518_v25 = vcombine.high %v2508_v31, %v4156_v7  ;;  %v4617_v58 = vpop.eup %4086  ;;  %v2515_v61 = vrot.slane %v2501_v28, %v4435_v49 }
 0x4df   : > { %2604 = vxpose.xlu1.c.b16.start.end [1/1] (short) (narrow) %v2560_v24, 16  ;;  %v2584_v37 = vcombine.high %v2560_v24, %v4156_v7  ;;  %v2585_v26 = vcombine.high %v2567_v41, %v4156_v7  ;;  %v2279_v60 = vsel %vm2248_vm8, %v4617_v58, 0.0  ;;  %v2583_v62 = vrot.slane %v2569_v34, %v4435_v49 }
 0x4e0   : > { %v2586_v51 = vcombine.high %v2576_v53, %v4156_v7  ;;  %v2519_v63 = vcombine.high %v2515_v61, %v4156_v7 }
 0x4e1   : > { %2620 = vxpose.xlu0.c.b16.start.end [1/1] (short) (narrow) %v2516_v35, 16  ;;  %v2587_v0 = vcombine.high %v2583_v62, %v4156_v7 }
 0x4e3   : > { %2636 = vxpose.xlu1.c.b16.start.end [1/1] (short) (narrow) %v2584_v37, 16 }
 0x4e5   : > { %2652 = vxpose.xlu0.c.b16.start.end [1/1] (short) (narrow) %v2499_v39, 16 }
 0x4e7   : > { %2668 = vxpose.xlu1.c.b16.start.end [1/1] (short) (narrow) %v2567_v41, 16 }
 0x4e9   : > { %2684 = vxpose.xlu0.c.b16.start.end [1/1] (short) (narrow) %v2517_v43, 16 }
 0x4eb   : > { %2700 = vxpose.xlu1.c.b16.start.end [1/1] (short) (narrow) %v2585_v26, 16 }
 0x4ed   : > { %2716 = vxpose.xlu0.c.b16.start.end [1/1] (short) (narrow) %v2508_v31, 16 }
 0x4ef   : > { %2732 = vxpose.xlu1.c.b16.start.end [1/1] (short) (narrow) %v2576_v53, 16 }
 0x4f1   : > { %2748 = vxpose.xlu0.c.b16.start.end [1/1] (short) (narrow) %v2518_v25, 16 }
 0x4f3   : > { %2764 = vxpose.xlu1.c.b16.start.end [1/1] (short) (narrow) %v2586_v51, 16 }
 0x4fe   : > { %2271 = vadd.xlane.f32.xlu0 %v2270_v56 }
 0x500   : > { %2274 = vadd.xlane.f32.xlu1 %v2273_v29 }
 0x502   : > { %2277 = vadd.xlane.f32.xlu0 %v2276_v59 }
 0x504   : > { %2280 = vadd.xlane.f32.xlu1 %v2279_v60 }
 0x52f   : > { %2780 = vxpose.xlu0.c.b16.start.end [1/1] (short) (narrow) %v2515_v61, 16 }
 0x531   : > { %2796 = vxpose.xlu1.c.b16.start.end [1/1] (short) (narrow) %v2583_v62, 16 }
 0x533   : > { %2812 = vxpose.xlu0.c.b16.start.end [1/1] (short) (narrow) %v2519_v63, 16 }
 0x535   : > { %2828 = vxpose.xlu1.c.b16.start.end [1/1] (short) (narrow) %v2587_v0, 16 }
 0x53f   : > { %v2596_v1 = vpop.trf.xlu0 }
 0x541   : > { %v2612_v2 = vpop.trf.xlu1 }
 0x543   : > { %v2628_v3 = vpop.trf.xlu0 }
 0x545   : > { %v2644_v4 = vpop.trf.xlu1 }
 0x547   : > { %v2660_v5 = vpop.trf.xlu0 }
 0x548   : > { %v2844_v20 = vcombine.low %v2596_v1, %v2660_v5 }
 0x549   : > { %v2676_v6 = vpop.trf.xlu1 }
 0x54a   : > { %v2893_v19 = vcombine.low %v2612_v2, %v2676_v6  ;;  %v2851_v24 = vrot.slane %v2844_v20, %v4427_v44 }
 0x54b   : > { %v2692_v8 = vpop.trf.xlu0 }
 0x54c   : > { %v2852_v23 = vcombine.low %v2628_v3, %v2692_v8  ;;  %v2900_v32 = vrot.slane %v2893_v19, %v4427_v44 }
 0x54d   : > { %v2708_v9 = vpop.trf.xlu1 }
 0x54e   : > { %v2901_v21 = vcombine.low %v2644_v4, %v2708_v9  ;;  %v2859_v35 = vrot.slane %v2852_v23, %v4427_v44 }
 0x54f   : > { %v2724_v11 = vpop.trf.xlu0 }
 0x550   : > { %v2908_v34 = vrot.slane %v2901_v21, %v4427_v44  ;;  %v2876_v52 = vcombine.low %v2851_v24, %v2859_v35 }
 0x551   : > { %v2740_v12 = vpop.trf.xlu1 }
 0x552   : > { %v2925_v26 = vcombine.low %v2900_v32, %v2908_v34  ;;  %v2883_v29 = vrot.slane %v2876_v52, %v4435_v49 }
 0x553   : > { %v2756_v13 = vpop.trf.xlu0 }
 0x555   : > { %v2772_v14 = vpop.trf.xlu1 }
 0x587   : > { %v2272_v15 = vpop.xlane.xlu0 %2271 }
 0x588   : > { %4088 = vrcp.f32 %v2272_v15 }
 0x589   : > { %v2275_v16 = vpop.xlane.xlu1 %2274 }
 0x58a   : > { %4090 = vrcp.f32 %v2275_v16 }
 0x58b   : > { %v2278_v18 = vpop.xlane.xlu0 %2277 }
 0x58c   : > { %4092 = vrcp.f32 %v2278_v18 }
 0x58d   : > { %v2281_v7 = vpop.xlane.xlu1 %2280 }
 0x58e   : > { %4094 = vrcp.f32 %v2281_v7 }
 0x591   : > { %v2788_v27 = vpop.trf.xlu0 }
 0x592   : > { %v2860_v28 = vcombine.low %v2724_v11, %v2788_v27 }
 0x593   : > { %v2804_v30 = vpop.trf.xlu1 }
 0x594   : > { %v2909_v37 = vcombine.low %v2740_v12, %v2804_v30  ;;  %v2867_v40 = vrot.slane %v2860_v28, %v4427_v44  ;;  %v4072_v12 = vld [vmem:[%s4328_s21 + $0x8] sm:$0xff]  }
 0x595   : > { %v4089_v33 = vpop.eup %4088  ;;  %v2820_v36 = vpop.trf.xlu0 }
 0x596   : > { %v2868_v38 = vcombine.low %v2756_v13, %v2820_v36  ;;  %v2286_v45 = vmul.f32 %v4089_v33, %v4081_v22  ;;  %v2916_v46 = vrot.slane %v2909_v37, %v4427_v44 }
 0x597   : > { %v4091_v39 = vpop.eup %4090  ;;  %v2836_v41 = vpop.trf.xlu1 }
 0x598   : > { %v2875_v42 = vrot.slane %v2868_v38, %v4427_v44  ;;  %v2917_v43 = vcombine.low %v2772_v14, %v2836_v41  ;;  %v2287_v47 = vmul.f32 %v4091_v39, %v4083_v55  ;;  %v2932_v55 = vrot.slane %v2925_v26, %v4435_v49 }
 0x599   : > { %v4093_v48 = vpop.eup %4092 }
 0x59a   : > { %v2884_v50 = vcombine.low %v2867_v40, %v2875_v42  ;;  %v2924_v31 = vrot.slane %v2917_v43, %v4427_v44  ;;  %v2290_v10 = vpack.c.bf16 %v2287_v47, %v2286_v45  ;;  %v2288_v54 = vmul.f32 %v4093_v48, %v4614_v57 }
 0x59b   : > { %v4095_v53 = vpop.eup %4094 }
 0x59c   : > { %v2891_v25 = vrot.slane %v2884_v50, %v4435_v49  ;;  %v2933_v51 = vcombine.low %v2916_v46, %v2924_v31  ;;  %v2952_v56 = vsel %vm2244_vm7, %v2290_v10, 0  ;;  %v2289_v22 = vmul.f32 %v4095_v53, %v4617_v58 }
 0x59d   : > { %3974 = vmatpush3.bf16.xpose.msra.mxu0 %v2952_v56 }
 0x59e   : > { %v2940_v59 = vrot.slane %v2933_v51, %v4435_v49  ;;  %v2291_v60 = vpack.c.bf16 %v2289_v22, %v2288_v54  ;;  %3985 = vmatprep.subr.bf16.mxu0 %v4151_v17  ;;  %v2892_v61 = vcombine.low %v2883_v29, %v2891_v25  ;;  %v4073_v54 = vld [vmem:[%s4328_s21] sm:$0xff]   ;;  %s4158_s21 = smov 16  }
 0x5a0   : > { %v2941_v62 = vcombine.low %v2932_v55, %v2940_v59  ;;  %v2999_v57 = vsel %vm2244_vm7, %v2291_v60, 0  ;;  %v2945_v58 = vshrl.u32 %v2892_v61, 16 }
 0x5a1   : > { %3980 = vmatpush3.bf16.xpose.msra.mxu1 %v2999_v57 }
 0x5a2   : > { %v2944_v63 = vpack.i.b16 %v2941_v62, %v2892_v61  ;;  %v2946_v0 = vshrl.u32 %v2941_v62, 16  ;;  %3993 = vmatprep.subr.bf16.mxu1 %v4151_v17 }
 0x5a4   : > { %3976 = vmatmul.mubr.msk.bf16.vlgmr.msra.gmra.mxu0 %vm2244_vm7, %v2944_v63  ;;  %v2947_v1 = vpack.i.b16 %v2946_v0, %v2945_v58 }
 0x5a5   : > { %3989 = vmatprep.mubr.msk.bf16.mxu0 %vm4152_vm4, %v4151_v17  ;;  %3986 = vmatpush3.bf16.msra.mxu0 %v4072_v12 }
 0x5a6   : > { %3987 = vmatprep.subr.bf16.mxu0 %v4151_v17 }
 0x5a8   : > { %3982 = vmatmul.mubr.msk.bf16.vlgmr.msra.gmra.mxu1 %vm2244_vm7, %v2947_v1 }
 0x5a9   : > { %3997 = vmatprep.mubr.msk.bf16.mxu1 %vm4152_vm4, %v4151_v17  ;;  %3988 = vmatpush3.bf16.msra.mxu0 %v4073_v54  ;;  %v3891_v54 = vld [vmem:[%s4836_s18] ss:$0 sm:$0xff] }
 0x5aa   : > { %4001 = vmatprep.subr.bf16.mxu0 %v4151_v17 }
 0x664   : > { %v2988_v2 = vpop.f32.mrf.mxu0 }
 0x665   : > { %3042 = vxpose.xlu0.b32.start [1/2] (short) (narrow) %v2988_v2, 16 }
 0x666   : > { %v3977_v3 = vpop.f32.mrf.mxu0 }
 0x668   : > { %v2991_v4 = vpop.f32.mrf.mxu0  ;;  %v3035_v5 = vpop.f32.mrf.mxu1 }
 0x669   : > { %3043 = vxpose.xlu0.b32.end [2/2] (short) (narrow) %v2991_v4, 16  ;;  %3074 = vxpose.xlu1.b32.start [1/2] (short) (narrow) %v3035_v5, 16  ;;  %v4108_v5 = vld [vmem:[#allocation2] sm:$0xff] }
 0x66a   : > { %v3978_v6 = vpop.f32.mrf.mxu0  ;;  %v3983_v8 = vpop.f32.mrf.mxu1 }
 0x66c   : > { %v3038_v9 = vpop.f32.mrf.mxu1 }
 0x66d   : > { %3075 = vxpose.xlu1.b32.end [2/2] (short) (narrow) %v3038_v9, 16 }
 0x66e   : > { %v3984_v11 = vpop.f32.mrf.mxu1 }
 0x6e1   : > { %v3058_v13 = vpop.trf.xlu0 }
 0x6e2   : > { %v3106_v14 = vcombine.high %v3058_v13, %v4151_v17  ;;  %v3113_v15 = vrot.slane %v3058_v13, %v4427_v44  ;;  %v4109_v13 = vld [vmem:[#allocation2 + $0x8] sm:$0xf] }
 0x6e4   : > { %v3120_v18 = vrot.slane %v3106_v14, %v4427_v44 }
 0x6e5   : > { %v3090_v16 = vpop.trf.xlu1  ;;  %v3059_v20 = vpop.trf.xlu0 }
 0x6e6   : > { %v3121_v7 = vcombine.high %v3090_v16, %v4151_v17  ;;  %v3128_v19 = vrot.slane %v3090_v16, %v4427_v44  ;;  %v3178_v28 = vrot.slane %v3059_v20, %v4427_v44 }
 0x6e8   : > { %v3135_v21 = vrot.slane %v3121_v7, %v4427_v44  ;;  %v3136_v23 = vcombine.low %v3113_v15, %v3128_v19  ;;  %v3137_v27 = vcombine.high %v3113_v15, %v3128_v19 }
 0x6e9   : > { %v3091_v30 = vpop.trf.xlu1 }
 0x6ea   : > { %v3144_v33 = vrot.slane %v3136_v23, %v4435_v49  ;;  %v3151_v32 = vrot.slane %v3137_v27, %v4435_v49  ;;  %v3152_v24 = vcombine.low %v3120_v18, %v3135_v21  ;;  %v3153_v34 = vcombine.high %v3120_v18, %v3135_v21 }
 0x6eb   : > { %v3185_v35 = vrot.slane %v3091_v30, %v4427_v44 }
 0x6ec   : > { %v3160_v36 = vrot.slane %v3152_v24, %v4435_v49  ;;  %v3167_v37 = vrot.slane %v3153_v34, %v4435_v49  ;;  %v3204_v38 = vcombine.low %v3144_v33, %v3151_v32  ;;  %v3882_v39 = vcombine.high %v3144_v33, %v3151_v32  ;;  %v4074_v33 = vld [vmem:[%s4832_s11 + $0x8] sm:$0xff]   ;;  %v4075_v32 = vld [vmem:[%s4832_s11] sm:$0xff]  }
 0x6ed   : > { %v3186_v40 = vcombine.low %v3178_v28, %v3185_v35  ;;  %v3187_v41 = vcombine.high %v3178_v28, %v3185_v35  ;;  %3994 = vmatpush3.bf16.msra.mxu1 %v4074_v33 }
 0x6ee   : > { %v3211_v42 = vrot.slane %v3204_v38, %v4427_v44  ;;  %v3219_v43 = vrot.slane %v3882_v39, %v4427_v44  ;;  %v3220_v45 = vcombine.low %v3160_v36, %v3167_v37  ;;  %v3883_v47 = vcombine.high %v3160_v36, %v3167_v37  ;;  %3995 = vmatprep.subr.bf16.mxu1 %v4151_v17 }
 0x6ef   : > { %v3194_v48 = vrot.slane %v3186_v40, %v4435_v49  ;;  %v3201_v26 = vrot.slane %v3187_v41, %v4435_v49  ;;  %v3889_v41 = vld [vmem:[%s869_s1] ss:$0 sm:$0xff] }
 0x6f0   : > { %v3227_v52 = vrot.slane %v3220_v45, %v4427_v44  ;;  %v3235_v46 = vrot.slane %v3883_v47, %v4427_v44  ;;  %v3236_v50 = vcombine.low %v3211_v42, %v3219_v43  ;;  %v3890_v47 = vld [vmem:[%s872_s6] ss:$0 sm:$0xff] }
 0x6f1   : > { %v3254_v31 = vcombine.low %v3194_v48, %v3201_v26  ;;  %v3884_v10 = vcombine.high %v3194_v48, %v3201_v26  ;;  %3996 = vmatpush3.bf16.msra.mxu1 %v4075_v32 }
 0x6f2   : > { %v3244_v53 = vcombine.low %v3227_v52, %v3235_v46  ;;  %v3243_v56 = vrot.slane %v3236_v50, %v4435_v49  ;;  %v4076_v50 = vld [vmem:[%s4833_s14 + $0x18] sm:$0xff]  }
 0x6f3   : > { %v3261_v25 = vrot.slane %v3254_v31, %v4427_v44  ;;  %v3269_v51 = vrot.slane %v3884_v10, %v4427_v44  ;;  %v4077_v31 = vld [vmem:[%s4833_s14 + $0x10] sm:$0xff]   ;;  %v4078_v10 = vld [vmem:[%s4833_s14 + $0x8] sm:$0xff]  }
 0x6f4   : > { %v3251_v22 = vrot.slane %v3244_v53, %v4435_v49  ;;  %v4079_v53 = vld [vmem:[%s4833_s14] sm:$0xff]  }
 0x6f5   : > { %v3270_v55 = vcombine.low %v3261_v25, %v3269_v51 }
 0x6f6   : > { %v3252_v29 = vcombine.low %v3243_v56, %v3251_v22  ;;  %v3253_v60 = vcombine.high %v3243_v56, %v3251_v22 }
 0x6f7   : > { %v3277_v59 = vrot.slane %v3270_v55, %v4435_v49  ;;  %v3885_v49 = vld [vmem:[%s4831_s7] ss:$0 sm:$0xff] }
 0x6f9   : > { %v3278_v61 = vcombine.high %v3277_v59, %v4151_v17 }
 0x6fb   : > { %v4063_v62 = vpack.i.bf16 %v3278_v61, %v3253_v60 }
 0x6fd   : > { %4064 = vrot.lane.b32.xlu0 %v4063_v62, %s4158_s21 }
 0x76f   : > { %v4065_v57 = vpop.permute.xlu0 %4064 }
 0x770   : > { %v4067_v44 = vunpack.i.h.bf16 %v4065_v57  ;;  %v4066_v63 = vunpack.i.l.bf16 %v4065_v57 }
 0x772   : > { %v3288_v0 = vsel %vm2151_vm6, %v3277_v59, %v4067_v44  ;;  %v3287_v58 = vsel %vm2151_vm6, %v3252_v29, %v4066_v63 }
 0x773   : > { %v3289_v1 = vpack.c.bf16 %v3288_v0, %v3287_v58 }
 0x775   : > { %3990 = vmatmul.mubr.msk.bf16.vlgmr.msra.gmra.mxu0 %vm1037_vm5, %v3289_v1 }
 0x776   : > { %4009 = vmatprep.mubr.msk.bf16.mxu0 %vm4152_vm4, %v4151_v17  ;;  %4002 = vmatpush3.bf16.msra.mxu0 %v4076_v50 }
 0x777   : > { %4003 = vmatprep.subr.bf16.mxu0 %v4151_v17 }
 0x77a   : > { %4004 = vmatpush3.bf16.msra.mxu0 %v4077_v31 }
 0x77b   : > { %4005 = vmatprep.subr.bf16.mxu0 %v4151_v17 }
 0x77e   : > { %4006 = vmatpush3.bf16.msra.mxu0 %v4078_v10 }
 0x77f   : > { %4007 = vmatprep.subr.bf16.mxu0 %v4151_v17 }
 0x782   : > { %4008 = vmatpush3.bf16.msra.mxu0 %v4079_v53 }
 0x835   : > { %v3350_v2 = vpop.f32.mrf.mxu0 }
 0x836   : > { %v3351_v3 = vadd.f32 %v3885_v49, %v3350_v2 }
 0x837   : > { %v3991_v4 = vpop.f32.mrf.mxu0 }
 0x838   : > { %v3357_v6 = vadd.f32 %v4108_v5, %v3351_v3 }
 0x839   : > { %v3353_v8 = vpop.f32.mrf.mxu0 }
 0x83a   : > { %v3354_v9 = vadd.f32 %v3885_v49, %v3353_v8  ;;  %v3361_v11 = vsel %vm1037_vm5, %v3357_v6, 0.0  ;;  %v3895_v49 = vld [vmem:[%s4837_s27] ss:$0 sm:$0xff] }
 0x83b   : > { %3362 = vadd.xlane.f32.xlu1 %v3361_v11  ;;  %v3992_v12 = vpop.f32.mrf.mxu0 }
 0x83c   : > { %v3358_v14 = vadd.f32 %v4109_v13, %v3354_v9 }
 0x83e   : > { %v3365_v15 = vsel %vm3364_vm9, %v3358_v14, 0.0 }
 0x83f   : > { %3366 = vadd.xlane.f32.xlu0 %v3365_v15 }
 0x8c4   : > { %v3363_v16 = vpop.xlane.xlu1 %3362 }
 0x8c5   : > { %v3369_v18 = vmul.f32 0.03125, %v3363_v16 }
 0x8c7   : > { %v3371_v7 = vsub.f32 %v3357_v6, %v3369_v18 }
 0x8c8   : > { %v3367_v19 = vpop.xlane.xlu0 %3366 }
 0x8c9   : > { %v3370_v20 = vmul.f32 0.03125, %v3367_v19  ;;  %v3373_v21 = vmul.f32 %v3371_v7, %v3371_v7 }
 0x8cb   : > { %v3372_v23 = vsub.f32 %v3358_v14, %v3370_v20  ;;  %v3375_v27 = vsel %vm1037_vm5, %v3373_v21, 0.0 }
 0x8cc   : > { %3376 = vadd.xlane.f32.xlu1 %v3375_v27 }
 0x8cd   : > { %v3374_v28 = vmul.f32 %v3372_v23, %v3372_v23 }
 0x8cf   : > { %v3378_v30 = vsel %vm3364_vm9, %v3374_v28, 0.0 }
 0x8d0   : > { %3379 = vadd.xlane.f32.xlu1 %v3378_v30 }
 0x955   : > { %v3377_v24 = vpop.xlane.xlu1 %3376 }
 0x956   : > { %v3381_v34 = vmul.f32 0.03125, %v3377_v24 }
 0x958   : > { %v3383_v35 = vadd.f32 1e-05, %v3381_v34 }
 0x959   : > { %v3380_v36 = vpop.xlane.xlu1 %3379 }
 0x95a   : > { %4096 = vrsqrt.f32 %v3383_v35  ;;  %v3382_v37 = vmul.f32 0.03125, %v3380_v36  ;;  %v3901_v36 = vld [vmem:[%s875_s13] ss:$0 sm:$0xff] }
 0x95c   : > { %v3384_v38 = vadd.f32 1e-05, %v3382_v37 }
 0x95e   : > { %4098 = vrsqrt.f32 %v3384_v38  ;;  %v3902_v38 = vld [vmem:[%s878_s3] ss:$0 sm:$0xff] }
 0x967   : > { %v4097_v39 = vpop.eup %4096 }
 0x968   : > { %v3387_v40 = vmul.f32 %v4097_v39, %v3371_v7 }
 0x96a   : > { %v3395_v45 = vmul.f32 %v3889_v41, %v3387_v40 }
 0x96b   : > { %v4099_v42 = vpop.eup %4098 }
 0x96c   : > { %v3388_v43 = vmul.f32 %v4099_v42, %v3372_v23  ;;  %v3403_v26 = vadd.f32 %v3890_v47, %v3395_v45 }
 0x96e   : > { %v3396_v48 = vmul.f32 %v3889_v41, %v3388_v43 }
 0x970   : > { %v3404_v52 = vadd.f32 %v3890_v47, %v3396_v48 }
 0x972   : > { %v3405_v46 = vpack.c.bf16 %v3404_v52, %v3403_v26 }
 0x974   : > { %3998 = vmatmul.mubr.msk.bf16.vlgmr.msra.gmra.mxu1 %vm1037_vm5, %v3405_v46 }
 0xa34   : > { %v3466_v25 = vpop.f32.mrf.mxu1 }
 0xa35   : > { %v3467_v51 = vadd.f32 %v3891_v54, %v3466_v25 }
 0xa36   : > { %v3999_v56 = vpop.f32.mrf.mxu1 }
 0xa37   : > { %v3475_v22 = vmul.f32 0.70710677, %v3467_v51  ;;  %v3473_v57 = vmul.f32 0.5, %v3467_v51 }
 0xa38   : > { %v3469_v55 = vpop.f32.mrf.mxu1 }
 0xa39   : > { %4100 = verf.f32 %v3475_v22  ;;  %v3470_v29 = vadd.f32 %v3891_v54, %v3469_v55 }
 0xa3a   : > { %v4000_v59 = vpop.f32.mrf.mxu1 }
 0xa3b   : > { %v3476_v60 = vmul.f32 0.70710677, %v3470_v29  ;;  %v3474_v44 = vmul.f32 0.5, %v3470_v29 }
 0xa3d   : > { %4102 = verf.f32 %v3476_v60 }
 0xa46   : > { %v4101_v61 = vpop.eup %4100 }
 0xa47   : > { %v3479_v17 = vadd.f32 1.0, %v4101_v61 }
 0xa49   : > { %v3481_v0 = vmul.f32 %v3479_v17, %v3473_v57 }
 0xa4a   : > { %v4103_v62 = vpop.eup %4102 }
 0xa4b   : > { %v3480_v63 = vadd.f32 1.0, %v4103_v62 }
 0xa4d   : > { %v3482_v58 = vmul.f32 %v3480_v63, %v3474_v44 }
 0xa4f   : > { %v3483_v1 = vpack.c.bf16 %v3482_v58, %v3481_v0 }
 0xa51   : > { %4010 = vmatmul.mubr.msk.bf16.vlgmr.msra.gmra.mxu0 %vm3523_vm10, %v3483_v1 }
 0xb11   : > { %v3561_v2 = vpop.f32.mrf.mxu0 }
 0xb12   : > { %v3562_v3 = vadd.f32 %v3895_v49, %v3561_v2 }
 0xb13   : > { %v4011_v4 = vpop.f32.mrf.mxu0 }
 0xb14   : > { %v3568_v5 = vadd.f32 %v3562_v3, %v3403_v26 }
 0xb15   : > { %v3564_v6 = vpop.f32.mrf.mxu0 }
 0xb16   : > { %v3565_v8 = vadd.f32 %v3895_v49, %v3564_v6  ;;  %v3572_v9 = vsel %vm1037_vm5, %v3568_v5, 0.0 }
 0xb17   : > { %3573 = vadd.xlane.f32.xlu1 %v3572_v9  ;;  %v4012_v11 = vpop.f32.mrf.mxu0 }
 0xb18   : > { %v3569_v12 = vadd.f32 %v3565_v8, %v3404_v52 }
 0xb1a   : > { %v3575_v13 = vsel %vm3364_vm9, %v3569_v12, 0.0 }
 0xb1b   : > { %3576 = vadd.xlane.f32.xlu1 %v3575_v13 }
 0xba0   : > { %v3574_v14 = vpop.xlane.xlu1 %3573 }
 0xba1   : > { %v3578_v15 = vmul.f32 0.03125, %v3574_v14 }
 0xba3   : > { %v3580_v16 = vsub.f32 %v3568_v5, %v3578_v15 }
 0xba4   : > { %v3577_v18 = vpop.xlane.xlu1 %3576 }
 0xba5   : > { %v3579_v7 = vmul.f32 0.03125, %v3577_v18  ;;  %v3582_v19 = vmul.f32 %v3580_v16, %v3580_v16 }
 0xba7   : > { %v3581_v20 = vsub.f32 %v3569_v12, %v3579_v7  ;;  %v3584_v21 = vsel %vm1037_vm5, %v3582_v19, 0.0 }
 0xba8   : > { %3585 = vadd.xlane.f32.xlu1 %v3584_v21 }
 0xba9   : > { %v3583_v23 = vmul.f32 %v3581_v20, %v3581_v20 }
 0xbab   : > { %v3587_v27 = vsel %vm3364_vm9, %v3583_v23, 0.0 }
 0xbac   : > { %3588 = vadd.xlane.f32.xlu1 %v3587_v27 }
 0xc31   : > { %v3586_v28 = vpop.xlane.xlu1 %3585 }
 0xc32   : > { %v3590_v30 = vmul.f32 0.03125, %v3586_v28 }
 0xc34   : > { %v3592_v33 = vadd.f32 1e-05, %v3590_v30 }
 0xc35   : > { %v3589_v32 = vpop.xlane.xlu1 %3588 }
 0xc36   : > { %4104 = vrsqrt.f32 %v3592_v33  ;;  %v3591_v24 = vmul.f32 0.03125, %v3589_v32 }
 0xc38   : > { %v3593_v34 = vadd.f32 1e-05, %v3591_v24 }
 0xc3a   : > { %4106 = vrsqrt.f32 %v3593_v34 }
 0xc43   : > { %v4105_v35 = vpop.eup %4104 }
 0xc44   : > { %v3596_v37 = vmul.f32 %v4105_v35, %v3580_v16 }
 0xc46   : > { %v3604_v39 = vmul.f32 %v3901_v36, %v3596_v37 }
 0xc47   : > { %v4107_v40 = vpop.eup %4106 }
 0xc48   : > { %v3612_v41 = vadd.f32 %v3902_v38, %v3604_v39  ;;  %v3597_v42 = vmul.f32 %v4107_v40, %v3581_v20 }
 0xc4a   : > { %3614 = vst.msk [vmem:[#allocation2] sm:$0xff] %vm1037_vm5, %v3612_v41  ;;  %v3605_v43 = vmul.f32 %v3901_v36, %v3597_v42  ;;  %3619 = sbr.rel (%p3903_p8) target bundleno = 3152 (0xc50), region = 108 }
 0xc4c   : > { %v3613_v45 = vadd.f32 %v3902_v38, %v3605_v43 }
 0xc4e   : > { %3615 = vst.msk [vmem:[#allocation2 + $0x8] sm:$0xf] %vm3364_vm9, %v3613_v45 }
 0xc4f   : > { %3620 = vst.msk [vmem:[%s4372_s5] sm:$0xf] %vm3364_vm9, %v3613_v45 }
 0xc50 PF: > { %s4841_s13 = sld [smem:[#allocation6_spill]] }
 0xc51   : > { %s4842_s1 = sld [smem:[#allocation4_spill]] }
 0xc52   : > { %s4843_s22 = sld [smem:[#allocation5_spill]] }
 0xc53   : > { %s4844_s23 = sld [smem:[#allocation7_spill]] }
 0xc54   : > { %s4845_s24 = sld [smem:[#allocation8_spill]] }
 0xc56   : > { %s30_s2 = sadd.s32 1, %s4841_s13  }
 0xc57   : > { %p27_p9 = scmp.ge.s32.totalorder %s30_s2, 6  }
 0xc59   :  { %29 = sbr.rel (!%p27_p9) target bundleno = 18 (0x12), region = 183 }

</bundles_post_ra>
